<compile_context>
chip_gen: v7x
topology: tpu7x:2x2x1
jax: 0.10.0
libtpu: 0.0.40
codegen_flags: <defaults>
</compile_context>

<pallas_src>
import math

import jax
import jax.numpy as jnp
from jax.experimental import pallas as pl
from jax.experimental.pallas import tpu as pltpu


# (C_out, kernel, stride, pad) for the three conv layers of CNNEncoder.
CONV_CFG = ((32, 8, 4, 1), (64, 4, 2, 1), (64, 3, 1, 1))


def _conv_out(size, k, s, p):
    return (size + 2 * p - k) // s + 1


# --------------------------- fused Pallas kernel ----------------------------- #
def _make_fused_kernel(c_in, h, w, nb):
    """Builds the fused 3-layer conv kernel for one batch block of `nb` images."""
    (c1, k1, s1, p1), cfg2, cfg3 = CONV_CFG
    h1, w1 = _conv_out(h, k1, s1, p1), _conv_out(w, k1, s1, p1)
    band = k1 * c_in                                  # contiguous slice per (oh,ow,ki)

    def im2col_layer1(x3):
        """x3: (nb, Hp, Wp*Cin) f32.  Because W and Cin are folded into one
        trailing axis, the k1*Cin inputs of a patch row are one contiguous
        slice.  Returns (nb*h1*w1, k1*k1*Cin) in (ki, kj, ci) column order."""
        col_blocks = []
        for ki in range(k1):
            rows = []
            for nidx in range(nb):
                for oh in range(h1):
                    r = oh * s1 + ki
                    for ow in range(w1):
                        start = ow * s1 * c_in
                        rows.append(x3[nidx, r:r + 1, start:start + band])
            col_blocks.append(rows[0] if len(rows) == 1
                              else jnp.concatenate(rows, axis=0))
        return (col_blocks[0] if k1 == 1
                else jnp.concatenate(col_blocks, axis=1))

    def im2col_inner(y_prev, hw_in, cin_l, cfg):
        """y_prev: (nb*h_in*w_in, cin_l) f32 activation, rows in (n, h, w) order.
        Builds the in-VMEM im2col (nb*h_out*w_out, k*k*cin_l); taps landing in
        the zero padding contribute zero rows / zero column blocks."""
        _, k, s, p = cfg
        h_in, w_in = hw_in
        h_out, w_out = _conv_out(h_in, k, s, p), _conv_out(w_in, k, s, p)
        m_out = nb * h_out * w_out
        zero_row = jnp.zeros((1, cin_l), jnp.float32)
        zero_blk = jnp.zeros((m_out, cin_l), jnp.float32)
        col_blocks = []
        for ki in range(k):
            for kj in range(k):
                rows, any_valid = [], False
                for nidx in range(nb):
                    for oh in range(h_out):
                        for ow in range(w_out):
                            ih, iw = oh * s + ki - p, ow * s + kj - p
                            if 0 <= ih < h_in and 0 <= iw < w_in:
                                m = nidx * h_in * w_in + ih * w_in + iw
                                rows.append(y_prev[m:m + 1, :])
                                any_valid = True
                            else:
                                rows.append(zero_row)
                if not any_valid:            # tap lies entirely inside the padding
                    col_blocks.append(zero_blk)
                else:
                    col_blocks.append(rows[0] if m_out == 1
                                      else jnp.concatenate(rows, axis=0))
        patches = (col_blocks[0] if len(col_blocks) == 1
                   else jnp.concatenate(col_blocks, axis=1))
        return patches, (h_out, w_out)

    h2 = _conv_out(h1, cfg2[1], cfg2[2], cfg2[3])
    w2 = _conv_out(w1, cfg2[1], cfg2[2], cfg2[3])
    h3 = _conv_out(h2, cfg3[1], cfg3[2], cfg3[3])
    w3 = _conv_out(w2, cfg3[1], cfg3[2], cfg3[3])
    c3, m3 = cfg3[0], h3 * w3

    def kernel(x_ref, w1_ref, b1_ref, w2_ref, b2_ref, w3_ref, b3_ref, o_ref):
        x3 = x_ref[...]                                           # (nb, Hp, Wp*Cin) f32

        # ---- layer 1: single batch-wide MXU matmul --------------------------
        pm1 = im2col_layer1(x3).astype(jnp.bfloat16)              # (nb*h1*w1, k1*k1*Cin)
        y = jnp.dot(pm1, w1_ref[...], preferred_element_type=jnp.float32)
        y = jnp.maximum(y + b1_ref[...], 0.0)                     # (nb*h1*w1, 32) f32

        # ---- layer 2 ---------------------------------------------------------
        pm2, hw = im2col_inner(y, (h1, w1), c1, cfg2)
        y = jnp.dot(pm2.astype(jnp.bfloat16), w2_ref[...],
                    preferred_element_type=jnp.float32)
        y = jnp.maximum(y + b2_ref[...], 0.0)                     # (nb*h2*w2, 64) f32

        # ---- layer 3 ---------------------------------------------------------
        pm3, hw = im2col_inner(y, hw, cfg2[0], cfg3)
        y = jnp.dot(pm3.astype(jnp.bfloat16), w3_ref[...],
                    preferred_element_type=jnp.float32)
        y = jnp.maximum(y + b3_ref[...], 0.0)                     # (nb*m3, 64) f32

        # ---- emit in PyTorch NCHW-flatten order: feature = c*m3 + (h*w3+w) --
        if m3 == 1:
            o_ref[...] = y.reshape(nb, c3)
        else:
            o_ref[...] = jnp.transpose(y.reshape(nb, m3, c3), (0, 2, 1)
                                       ).reshape(nb, c3 * m3)

    return kernel, (h1, w1, h2, w2, h3, w3)


# ------------------------------- parameters ---------------------------------- #
def init_cnn_encoder_params(key, c):
    """PyTorch-like init: U(-1/sqrt(fan_in), +1/sqrt(fan_in)), OIHW weights."""
    def uinit(k, shape, fan_in):
        bound = 1.0 / math.sqrt(fan_in)
        return jax.random.uniform(k, shape, jnp.float32, -bound, bound)

    keys = jax.random.split(key, 6)
    (c1, k1, _, _), (c2, k2, _, _), (c3, k3, _, _) = CONV_CFG
    return {
        "w1": uinit(keys[0], (c1, c, k1, k1), c * k1 * k1),
        "b1": uinit(keys[1], (c1,), c * k1 * k1),
        "w2": uinit(keys[2], (c2, c1, k2, k2), c1 * k2 * k2),
        "b2": uinit(keys[3], (c2,), c1 * k2 * k2),
        "w3": uinit(keys[4], (c3, c2, k3, k3), c2 * k3 * k3),
        "b3": uinit(keys[5], (c3,), c2 * k3 * k3),
    }


def prepare_params(params):
    """One-time weight repacking (outside the hot forward path):
    OIHW conv weights -> bf16 (k*k*Cin, Cout) im2col matrices in (ki, kj, ci)
    row order; biases -> f32 (1, Cout)."""
    prep = {}
    for i in (1, 2, 3):
        wq = params[f"w{i}"]                      # (Cout, Cin, k, k)
        cout, cin, k, _ = wq.shape
        wmat = jnp.transpose(wq, (2, 3, 1, 0)).reshape(k * k * cin, cout)
        prep[f"w{i}"] = wmat.astype(jnp.bfloat16)
        prep[f"b{i}"] = params[f"b{i}"].reshape(1, cout).astype(jnp.float32)
    return prep


# --------------------------------- forward ----------------------------------- #
def cnn_encoder_forward(prep, x_nchw):
    """x_nchw: (N, C, H, W) f32 -> (N, 64*H3*W3) f32 in PyTorch flatten order."""
    n, c_in, h, w = x_nchw.shape
    (c1, k1, s1, p1), (c2, k2, s2, p2), (c3, k3, s3, p3) = CONV_CFG

    # Whole (small) batch in one grid step; cap the per-step block at 8 images
    # and pad the batch so every step is full.
    nb = n if n <= 8 else 8
    n_blocks = -(-n // nb)
    n_pad = n_blocks * nb

    kernel, (h1, w1, h2, w2, h3, w3) = _make_fused_kernel(c_in, h, w, nb)
    m3 = h3 * w3
    feat = c3 * m3

    # NCHW -> NHWC, zero-pad spatially, fold (W, C) into one trailing dim.
    # Cheap relayout of the raw input — NOT an im2col (no duplication in HBM).
    hp, wp = h + 2 * p1, w + 2 * p1
    x = jnp.transpose(x_nchw, (0, 2, 3, 1))
    x = jnp.pad(x, ((0, n_pad - n), (p1, p1), (p1, p1), (0, 0)))
    x2d = x.reshape(n_pad, hp, wp * c_in)

    flops = 2 * n_pad * (h1 * w1 * (k1 * k1 * c_in) * c1
                         + h2 * w2 * (k2 * k2 * c1) * c2
                         + h3 * w3 * (k3 * k3 * c2) * c3)
    bytes_accessed = (int(x2d.size) * 4 + n_pad * feat * 4
                      + sum(int(v.size) * v.dtype.itemsize for v in prep.values()))

    out = pl.pallas_call(
        kernel,
        out_shape=jax.ShapeDtypeStruct((n_pad, feat), jnp.float32),
        grid=(n_blocks,),
        in_specs=[
            pl.BlockSpec((nb, hp, wp * c_in), lambda i: (i, 0, 0)),
            pl.BlockSpec(prep["w1"].shape, lambda i: (0, 0)),   # VMEM-resident weights
            pl.BlockSpec(prep["b1"].shape, lambda i: (0, 0)),
            pl.BlockSpec(prep["w2"].shape, lambda i: (0, 0)),
            pl.BlockSpec(prep["b2"].shape, lambda i: (0, 0)),
            pl.BlockSpec(prep["w3"].shape, lambda i: (0, 0)),
            pl.BlockSpec(prep["b3"].shape, lambda i: (0, 0)),
        ],
        out_specs=pl.BlockSpec((nb, feat), lambda i: (i, 0)),
        compiler_params=pltpu.CompilerParams(
            dimension_semantics=("parallel",),          # v7x: batch blocks over 2 TCs
            vmem_limit_bytes=32 * 1024 * 1024,
        ),
        cost_estimate=pl.CostEstimate(
            flops=flops, transcendentals=0, bytes_accessed=bytes_accessed),
    )(x2d, prep["w1"], prep["b1"], prep["w2"], prep["b2"], prep["w3"], prep["b3"])

    return out[:n]        # already PyTorch (N, C*H*W) flatten order


# -------------------------- pure-JAX reference (check) ----------------------- #
def _reference_forward(params, x_nchw):
    y = x_nchw
    for i, (_, k, s, p) in enumerate(CONV_CFG, start=1):
        y = jax.lax.conv_general_dilated(
            y, params[f"w{i}"], window_strides=(s, s), padding=[(p, p), (p, p)],
            dimension_numbers=("NCHW", "OIHW", "NCHW"))
        y = jnp.maximum(y + params[f"b{i}"].reshape(1, -1, 1, 1), 0.0)
    return y.reshape(y.shape[0], -1)


if __name__ == "__main__":
    # Small shapes consistent with the module: batch=2, channels=4, spatial=16.
    N, C, H, W = 2, 4, 16, 16
    key = jax.random.PRNGKey(0)
    k_param, k_x = jax.random.split(key)

    params = init_cnn_encoder_params(k_param, C)
    prep = prepare_params(params)          # one-time bf16 weight repacking
    x = jax.random.normal(k_x, (N, C, H, W), dtype=jnp.float32)

    fwd = jax.jit(cnn_encoder_forward)
    out = jax.block_until_ready(fwd(prep, x))

    ref = _reference_forward(params, x)    # f32 XLA conv reference
    assert out.shape == ref.shape, (out.shape, ref.shape)
    assert bool(jnp.all(jnp.isfinite(out)))
    # bf16 MXU operands (f32 accumulation) -> loose tolerance vs the f32 reference.
    assert bool(jnp.allclose(out, ref, rtol=5e-2, atol=5e-2)), float(
        jnp.max(jnp.abs(out - ref)))
    print("KERNEL_OK")
</pallas_src>

<mosaic_0001>
module attributes {stable_mosaic.version = 11 : i64} {
  func.func @kernel(%arg0: i32, %arg1: memref<2x18x72xf32, #tpu.memory_space<vmem>>, %arg2: memref<256x32xbf16, #tpu.memory_space<vmem>>, %arg3: memref<1x32xf32, #tpu.memory_space<vmem>>, %arg4: memref<512x64xbf16, #tpu.memory_space<vmem>>, %arg5: memref<1x64xf32, #tpu.memory_space<vmem>>, %arg6: memref<576x64xbf16, #tpu.memory_space<vmem>>, %arg7: memref<1x64xf32, #tpu.memory_space<vmem>>, %arg8: memref<2x64xf32, #tpu.memory_space<vmem>>) attributes {dimension_semantics = [#tpu.dimension_semantics<parallel>], iteration_bounds = array<i64: 1>, scalar_prefetch = 0 : i64, scratch_operands = 0 : i64, tpu.core_type = #tpu.core_type<tc>, window_params = [{transform_indices = @transform_0, window_bounds = array<i64: 2, 18, 72>}, {pipeline_mode = #tpu.pipeline_mode<synchronous>, transform_indices = @transform_1, window_bounds = array<i64: 256, 32>}, {pipeline_mode = #tpu.pipeline_mode<synchronous>, transform_indices = @transform_2, window_bounds = array<i64: 1, 32>}, {pipeline_mode = #tpu.pipeline_mode<synchronous>, transform_indices = @transform_3, window_bounds = array<i64: 512, 64>}, {pipeline_mode = #tpu.pipeline_mode<synchronous>, transform_indices = @transform_4, window_bounds = array<i64: 1, 64>}, {pipeline_mode = #tpu.pipeline_mode<synchronous>, transform_indices = @transform_5, window_bounds = array<i64: 576, 64>}, {pipeline_mode = #tpu.pipeline_mode<synchronous>, transform_indices = @transform_6, window_bounds = array<i64: 1, 64>}, {transform_indices = @transform_7, window_bounds = array<i64: 2, 64>}]} {
    %c0 = arith.constant 0 : index
    %c0_0 = arith.constant 0 : index
    %c0_1 = arith.constant 0 : index
    %0 = vector.load %arg1[%c0, %c0_0, %c0_1] : memref<2x18x72xf32, #tpu.memory_space<vmem>>, vector<2x18x72xf32>
    %1 = vector.extract_strided_slice %0 {offsets = [0, 0, 0], sizes = [1, 1, 32], strides = [1, 1, 1]} : vector<2x18x72xf32> to vector<1x1x32xf32>
    %2 = vector.shape_cast %1 : vector<1x1x32xf32> to vector<1x32xf32>
    %3 = vector.extract_strided_slice %0 {offsets = [0, 0, 16], sizes = [1, 1, 32], strides = [1, 1, 1]} : vector<2x18x72xf32> to vector<1x1x32xf32>
    %4 = vector.shape_cast %3 : vector<1x1x32xf32> to vector<1x32xf32>
    %5 = vector.extract_strided_slice %0 {offsets = [0, 0, 32], sizes = [1, 1, 32], strides = [1, 1, 1]} : vector<2x18x72xf32> to vector<1x1x32xf32>
    %6 = vector.shape_cast %5 : vector<1x1x32xf32> to vector<1x32xf32>
    %7 = vector.extract_strided_slice %0 {offsets = [0, 4, 0], sizes = [1, 1, 32], strides = [1, 1, 1]} : vector<2x18x72xf32> to vector<1x1x32xf32>
    %8 = vector.shape_cast %7 : vector<1x1x32xf32> to vector<1x32xf32>
    %9 = vector.extract_strided_slice %0 {offsets = [0, 4, 16], sizes = [1, 1, 32], strides = [1, 1, 1]} : vector<2x18x72xf32> to vector<1x1x32xf32>
    %10 = vector.shape_cast %9 : vector<1x1x32xf32> to vector<1x32xf32>
    %11 = vector.extract_strided_slice %0 {offsets = [0, 4, 32], sizes = [1, 1, 32], strides = [1, 1, 1]} : vector<2x18x72xf32> to vector<1x1x32xf32>
    %12 = vector.shape_cast %11 : vector<1x1x32xf32> to vector<1x32xf32>
    %13 = vector.extract_strided_slice %0 {offsets = [0, 8, 0], sizes = [1, 1, 32], strides = [1, 1, 1]} : vector<2x18x72xf32> to vector<1x1x32xf32>
    %14 = vector.shape_cast %13 : vector<1x1x32xf32> to vector<1x32xf32>
    %15 = vector.extract_strided_slice %0 {offsets = [0, 8, 16], sizes = [1, 1, 32], strides = [1, 1, 1]} : vector<2x18x72xf32> to vector<1x1x32xf32>
    %16 = vector.shape_cast %15 : vector<1x1x32xf32> to vector<1x32xf32>
    %17 = vector.extract_strided_slice %0 {offsets = [0, 8, 32], sizes = [1, 1, 32], strides = [1, 1, 1]} : vector<2x18x72xf32> to vector<1x1x32xf32>
    %18 = vector.shape_cast %17 : vector<1x1x32xf32> to vector<1x32xf32>
    %19 = vector.extract_strided_slice %0 {offsets = [1, 0, 0], sizes = [1, 1, 32], strides = [1, 1, 1]} : vector<2x18x72xf32> to vector<1x1x32xf32>
    %20 = vector.shape_cast %19 : vector<1x1x32xf32> to vector<1x32xf32>
    %21 = vector.extract_strided_slice %0 {offsets = [1, 0, 16], sizes = [1, 1, 32], strides = [1, 1, 1]} : vector<2x18x72xf32> to vector<1x1x32xf32>
    %22 = vector.shape_cast %21 : vector<1x1x32xf32> to vector<1x32xf32>
    %23 = vector.extract_strided_slice %0 {offsets = [1, 0, 32], sizes = [1, 1, 32], strides = [1, 1, 1]} : vector<2x18x72xf32> to vector<1x1x32xf32>
    %24 = vector.shape_cast %23 : vector<1x1x32xf32> to vector<1x32xf32>
    %25 = vector.extract_strided_slice %0 {offsets = [1, 4, 0], sizes = [1, 1, 32], strides = [1, 1, 1]} : vector<2x18x72xf32> to vector<1x1x32xf32>
    %26 = vector.shape_cast %25 : vector<1x1x32xf32> to vector<1x32xf32>
    %27 = vector.extract_strided_slice %0 {offsets = [1, 4, 16], sizes = [1, 1, 32], strides = [1, 1, 1]} : vector<2x18x72xf32> to vector<1x1x32xf32>
    %28 = vector.shape_cast %27 : vector<1x1x32xf32> to vector<1x32xf32>
    %29 = vector.extract_strided_slice %0 {offsets = [1, 4, 32], sizes = [1, 1, 32], strides = [1, 1, 1]} : vector<2x18x72xf32> to vector<1x1x32xf32>
    %30 = vector.shape_cast %29 : vector<1x1x32xf32> to vector<1x32xf32>
    %31 = vector.extract_strided_slice %0 {offsets = [1, 8, 0], sizes = [1, 1, 32], strides = [1, 1, 1]} : vector<2x18x72xf32> to vector<1x1x32xf32>
    %32 = vector.shape_cast %31 : vector<1x1x32xf32> to vector<1x32xf32>
    %33 = vector.extract_strided_slice %0 {offsets = [1, 8, 16], sizes = [1, 1, 32], strides = [1, 1, 1]} : vector<2x18x72xf32> to vector<1x1x32xf32>
    %34 = vector.shape_cast %33 : vector<1x1x32xf32> to vector<1x32xf32>
    %35 = vector.extract_strided_slice %0 {offsets = [1, 8, 32], sizes = [1, 1, 32], strides = [1, 1, 1]} : vector<2x18x72xf32> to vector<1x1x32xf32>
    %36 = vector.shape_cast %35 : vector<1x1x32xf32> to vector<1x32xf32>
    %37 = tpu.concatenate %2, %4, %6, %8, %10, %12, %14, %16, %18, %20, %22, %24, %26, %28, %30, %32 in 0 : vector<1x32xf32>, vector<1x32xf32>, vector<1x32xf32>, vector<1x32xf32>, vector<1x32xf32>, vector<1x32xf32>, vector<1x32xf32>, vector<1x32xf32>, vector<1x32xf32>, vector<1x32xf32>, vector<1x32xf32>, vector<1x32xf32>, vector<1x32xf32>, vector<1x32xf32>, vector<1x32xf32>, vector<1x32xf32> -> vector<16x32xf32>
    %38 = tpu.concatenate %34, %36 in 0 : vector<1x32xf32>, vector<1x32xf32> -> vector<2x32xf32>
    %39 = tpu.concatenate %37, %38 in 0 : vector<16x32xf32>, vector<2x32xf32> -> vector<18x32xf32>
    %40 = vector.extract_strided_slice %0 {offsets = [0, 1, 0], sizes = [1, 1, 32], strides = [1, 1, 1]} : vector<2x18x72xf32> to vector<1x1x32xf32>
    %41 = vector.shape_cast %40 : vector<1x1x32xf32> to vector<1x32xf32>
    %42 = vector.extract_strided_slice %0 {offsets = [0, 1, 16], sizes = [1, 1, 32], strides = [1, 1, 1]} : vector<2x18x72xf32> to vector<1x1x32xf32>
    %43 = vector.shape_cast %42 : vector<1x1x32xf32> to vector<1x32xf32>
    %44 = vector.extract_strided_slice %0 {offsets = [0, 1, 32], sizes = [1, 1, 32], strides = [1, 1, 1]} : vector<2x18x72xf32> to vector<1x1x32xf32>
    %45 = vector.shape_cast %44 : vector<1x1x32xf32> to vector<1x32xf32>
    %46 = vector.extract_strided_slice %0 {offsets = [0, 5, 0], sizes = [1, 1, 32], strides = [1, 1, 1]} : vector<2x18x72xf32> to vector<1x1x32xf32>
    %47 = vector.shape_cast %46 : vector<1x1x32xf32> to vector<1x32xf32>
    %48 = vector.extract_strided_slice %0 {offsets = [0, 5, 16], sizes = [1, 1, 32], strides = [1, 1, 1]} : vector<2x18x72xf32> to vector<1x1x32xf32>
    %49 = vector.shape_cast %48 : vector<1x1x32xf32> to vector<1x32xf32>
    %50 = vector.extract_strided_slice %0 {offsets = [0, 5, 32], sizes = [1, 1, 32], strides = [1, 1, 1]} : vector<2x18x72xf32> to vector<1x1x32xf32>
    %51 = vector.shape_cast %50 : vector<1x1x32xf32> to vector<1x32xf32>
    %52 = vector.extract_strided_slice %0 {offsets = [0, 9, 0], sizes = [1, 1, 32], strides = [1, 1, 1]} : vector<2x18x72xf32> to vector<1x1x32xf32>
    %53 = vector.shape_cast %52 : vector<1x1x32xf32> to vector<1x32xf32>
    %54 = vector.extract_strided_slice %0 {offsets = [0, 9, 16], sizes = [1, 1, 32], strides = [1, 1, 1]} : vector<2x18x72xf32> to vector<1x1x32xf32>
    %55 = vector.shape_cast %54 : vector<1x1x32xf32> to vector<1x32xf32>
    %56 = vector.extract_strided_slice %0 {offsets = [0, 9, 32], sizes = [1, 1, 32], strides = [1, 1, 1]} : vector<2x18x72xf32> to vector<1x1x32xf32>
    %57 = vector.shape_cast %56 : vector<1x1x32xf32> to vector<1x32xf32>
    %58 = vector.extract_strided_slice %0 {offsets = [1, 1, 0], sizes = [1, 1, 32], strides = [1, 1, 1]} : vector<2x18x72xf32> to vector<1x1x32xf32>
    %59 = vector.shape_cast %58 : vector<1x1x32xf32> to vector<1x32xf32>
    %60 = vector.extract_strided_slice %0 {offsets = [1, 1, 16], sizes = [1, 1, 32], strides = [1, 1, 1]} : vector<2x18x72xf32> to vector<1x1x32xf32>
    %61 = vector.shape_cast %60 : vector<1x1x32xf32> to vector<1x32xf32>
    %62 = vector.extract_strided_slice %0 {offsets = [1, 1, 32], sizes = [1, 1, 32], strides = [1, 1, 1]} : vector<2x18x72xf32> to vector<1x1x32xf32>
    %63 = vector.shape_cast %62 : vector<1x1x32xf32> to vector<1x32xf32>
    %64 = vector.extract_strided_slice %0 {offsets = [1, 5, 0], sizes = [1, 1, 32], strides = [1, 1, 1]} : vector<2x18x72xf32> to vector<1x1x32xf32>
    %65 = vector.shape_cast %64 : vector<1x1x32xf32> to vector<1x32xf32>
    %66 = vector.extract_strided_slice %0 {offsets = [1, 5, 16], sizes = [1, 1, 32], strides = [1, 1, 1]} : vector<2x18x72xf32> to vector<1x1x32xf32>
    %67 = vector.shape_cast %66 : vector<1x1x32xf32> to vector<1x32xf32>
    %68 = vector.extract_strided_slice %0 {offsets = [1, 5, 32], sizes = [1, 1, 32], strides = [1, 1, 1]} : vector<2x18x72xf32> to vector<1x1x32xf32>
    %69 = vector.shape_cast %68 : vector<1x1x32xf32> to vector<1x32xf32>
    %70 = vector.extract_strided_slice %0 {offsets = [1, 9, 0], sizes = [1, 1, 32], strides = [1, 1, 1]} : vector<2x18x72xf32> to vector<1x1x32xf32>
    %71 = vector.shape_cast %70 : vector<1x1x32xf32> to vector<1x32xf32>
    %72 = vector.extract_strided_slice %0 {offsets = [1, 9, 16], sizes = [1, 1, 32], strides = [1, 1, 1]} : vector<2x18x72xf32> to vector<1x1x32xf32>
    %73 = vector.shape_cast %72 : vector<1x1x32xf32> to vector<1x32xf32>
    %74 = vector.extract_strided_slice %0 {offsets = [1, 9, 32], sizes = [1, 1, 32], strides = [1, 1, 1]} : vector<2x18x72xf32> to vector<1x1x32xf32>
    %75 = vector.shape_cast %74 : vector<1x1x32xf32> to vector<1x32xf32>
    %76 = tpu.concatenate %41, %43, %45, %47, %49, %51, %53, %55, %57, %59, %61, %63, %65, %67, %69, %71 in 0 : vector<1x32xf32>, vector<1x32xf32>, vector<1x32xf32>, vector<1x32xf32>, vector<1x32xf32>, vector<1x32xf32>, vector<1x32xf32>, vector<1x32xf32>, vector<1x32xf32>, vector<1x32xf32>, vector<1x32xf32>, vector<1x32xf32>, vector<1x32xf32>, vector<1x32xf32>, vector<1x32xf32>, vector<1x32xf32> -> vector<16x32xf32>
    %77 = tpu.concatenate %73, %75 in 0 : vector<1x32xf32>, vector<1x32xf32> -> vector<2x32xf32>
    %78 = tpu.concatenate %76, %77 in 0 : vector<16x32xf32>, vector<2x32xf32> -> vector<18x32xf32>
    %79 = vector.extract_strided_slice %0 {offsets = [0, 2, 0], sizes = [1, 1, 32], strides = [1, 1, 1]} : vector<2x18x72xf32> to vector<1x1x32xf32>
    %80 = vector.shape_cast %79 : vector<1x1x32xf32> to vector<1x32xf32>
    %81 = vector.extract_strided_slice %0 {offsets = [0, 2, 16], sizes = [1, 1, 32], strides = [1, 1, 1]} : vector<2x18x72xf32> to vector<1x1x32xf32>
    %82 = vector.shape_cast %81 : vector<1x1x32xf32> to vector<1x32xf32>
    %83 = vector.extract_strided_slice %0 {offsets = [0, 2, 32], sizes = [1, 1, 32], strides = [1, 1, 1]} : vector<2x18x72xf32> to vector<1x1x32xf32>
    %84 = vector.shape_cast %83 : vector<1x1x32xf32> to vector<1x32xf32>
    %85 = vector.extract_strided_slice %0 {offsets = [0, 6, 0], sizes = [1, 1, 32], strides = [1, 1, 1]} : vector<2x18x72xf32> to vector<1x1x32xf32>
    %86 = vector.shape_cast %85 : vector<1x1x32xf32> to vector<1x32xf32>
    %87 = vector.extract_strided_slice %0 {offsets = [0, 6, 16], sizes = [1, 1, 32], strides = [1, 1, 1]} : vector<2x18x72xf32> to vector<1x1x32xf32>
    %88 = vector.shape_cast %87 : vector<1x1x32xf32> to vector<1x32xf32>
    %89 = vector.extract_strided_slice %0 {offsets = [0, 6, 32], sizes = [1, 1, 32], strides = [1, 1, 1]} : vector<2x18x72xf32> to vector<1x1x32xf32>
    %90 = vector.shape_cast %89 : vector<1x1x32xf32> to vector<1x32xf32>
    %91 = vector.extract_strided_slice %0 {offsets = [0, 10, 0], sizes = [1, 1, 32], strides = [1, 1, 1]} : vector<2x18x72xf32> to vector<1x1x32xf32>
    %92 = vector.shape_cast %91 : vector<1x1x32xf32> to vector<1x32xf32>
    %93 = vector.extract_strided_slice %0 {offsets = [0, 10, 16], sizes = [1, 1, 32], strides = [1, 1, 1]} : vector<2x18x72xf32> to vector<1x1x32xf32>
    %94 = vector.shape_cast %93 : vector<1x1x32xf32> to vector<1x32xf32>
    %95 = vector.extract_strided_slice %0 {offsets = [0, 10, 32], sizes = [1, 1, 32], strides = [1, 1, 1]} : vector<2x18x72xf32> to vector<1x1x32xf32>
    %96 = vector.shape_cast %95 : vector<1x1x32xf32> to vector<1x32xf32>
    %97 = vector.extract_strided_slice %0 {offsets = [1, 2, 0], sizes = [1, 1, 32], strides = [1, 1, 1]} : vector<2x18x72xf32> to vector<1x1x32xf32>
    %98 = vector.shape_cast %97 : vector<1x1x32xf32> to vector<1x32xf32>
    %99 = vector.extract_strided_slice %0 {offsets = [1, 2, 16], sizes = [1, 1, 32], strides = [1, 1, 1]} : vector<2x18x72xf32> to vector<1x1x32xf32>
    %100 = vector.shape_cast %99 : vector<1x1x32xf32> to vector<1x32xf32>
    %101 = vector.extract_strided_slice %0 {offsets = [1, 2, 32], sizes = [1, 1, 32], strides = [1, 1, 1]} : vector<2x18x72xf32> to vector<1x1x32xf32>
    %102 = vector.shape_cast %101 : vector<1x1x32xf32> to vector<1x32xf32>
    %103 = vector.extract_strided_slice %0 {offsets = [1, 6, 0], sizes = [1, 1, 32], strides = [1, 1, 1]} : vector<2x18x72xf32> to vector<1x1x32xf32>
    %104 = vector.shape_cast %103 : vector<1x1x32xf32> to vector<1x32xf32>
    %105 = vector.extract_strided_slice %0 {offsets = [1, 6, 16], sizes = [1, 1, 32], strides = [1, 1, 1]} : vector<2x18x72xf32> to vector<1x1x32xf32>
    %106 = vector.shape_cast %105 : vector<1x1x32xf32> to vector<1x32xf32>
    %107 = vector.extract_strided_slice %0 {offsets = [1, 6, 32], sizes = [1, 1, 32], strides = [1, 1, 1]} : vector<2x18x72xf32> to vector<1x1x32xf32>
    %108 = vector.shape_cast %107 : vector<1x1x32xf32> to vector<1x32xf32>
    %109 = vector.extract_strided_slice %0 {offsets = [1, 10, 0], sizes = [1, 1, 32], strides = [1, 1, 1]} : vector<2x18x72xf32> to vector<1x1x32xf32>
    %110 = vector.shape_cast %109 : vector<1x1x32xf32> to vector<1x32xf32>
    %111 = vector.extract_strided_slice %0 {offsets = [1, 10, 16], sizes = [1, 1, 32], strides = [1, 1, 1]} : vector<2x18x72xf32> to vector<1x1x32xf32>
    %112 = vector.shape_cast %111 : vector<1x1x32xf32> to vector<1x32xf32>
    %113 = vector.extract_strided_slice %0 {offsets = [1, 10, 32], sizes = [1, 1, 32], strides = [1, 1, 1]} : vector<2x18x72xf32> to vector<1x1x32xf32>
    %114 = vector.shape_cast %113 : vector<1x1x32xf32> to vector<1x32xf32>
    %115 = tpu.concatenate %80, %82, %84, %86, %88, %90, %92, %94, %96, %98, %100, %102, %104, %106, %108, %110 in 0 : vector<1x32xf32>, vector<1x32xf32>, vector<1x32xf32>, vector<1x32xf32>, vector<1x32xf32>, vector<1x32xf32>, vector<1x32xf32>, vector<1x32xf32>, vector<1x32xf32>, vector<1x32xf32>, vector<1x32xf32>, vector<1x32xf32>, vector<1x32xf32>, vector<1x32xf32>, vector<1x32xf32>, vector<1x32xf32> -> vector<16x32xf32>
    %116 = tpu.concatenate %112, %114 in 0 : vector<1x32xf32>, vector<1x32xf32> -> vector<2x32xf32>
    %117 = tpu.concatenate %115, %116 in 0 : vector<16x32xf32>, vector<2x32xf32> -> vector<18x32xf32>
    %118 = vector.extract_strided_slice %0 {offsets = [0, 3, 0], sizes = [1, 1, 32], strides = [1, 1, 1]} : vector<2x18x72xf32> to vector<1x1x32xf32>
    %119 = vector.shape_cast %118 : vector<1x1x32xf32> to vector<1x32xf32>
    %120 = vector.extract_strided_slice %0 {offsets = [0, 3, 16], sizes = [1, 1, 32], strides = [1, 1, 1]} : vector<2x18x72xf32> to vector<1x1x32xf32>
    %121 = vector.shape_cast %120 : vector<1x1x32xf32> to vector<1x32xf32>
    %122 = vector.extract_strided_slice %0 {offsets = [0, 3, 32], sizes = [1, 1, 32], strides = [1, 1, 1]} : vector<2x18x72xf32> to vector<1x1x32xf32>
    %123 = vector.shape_cast %122 : vector<1x1x32xf32> to vector<1x32xf32>
    %124 = vector.extract_strided_slice %0 {offsets = [0, 7, 0], sizes = [1, 1, 32], strides = [1, 1, 1]} : vector<2x18x72xf32> to vector<1x1x32xf32>
    %125 = vector.shape_cast %124 : vector<1x1x32xf32> to vector<1x32xf32>
    %126 = vector.extract_strided_slice %0 {offsets = [0, 7, 16], sizes = [1, 1, 32], strides = [1, 1, 1]} : vector<2x18x72xf32> to vector<1x1x32xf32>
    %127 = vector.shape_cast %126 : vector<1x1x32xf32> to vector<1x32xf32>
    %128 = vector.extract_strided_slice %0 {offsets = [0, 7, 32], sizes = [1, 1, 32], strides = [1, 1, 1]} : vector<2x18x72xf32> to vector<1x1x32xf32>
    %129 = vector.shape_cast %128 : vector<1x1x32xf32> to vector<1x32xf32>
    %130 = vector.extract_strided_slice %0 {offsets = [0, 11, 0], sizes = [1, 1, 32], strides = [1, 1, 1]} : vector<2x18x72xf32> to vector<1x1x32xf32>
    %131 = vector.shape_cast %130 : vector<1x1x32xf32> to vector<1x32xf32>
    %132 = vector.extract_strided_slice %0 {offsets = [0, 11, 16], sizes = [1, 1, 32], strides = [1, 1, 1]} : vector<2x18x72xf32> to vector<1x1x32xf32>
    %133 = vector.shape_cast %132 : vector<1x1x32xf32> to vector<1x32xf32>
    %134 = vector.extract_strided_slice %0 {offsets = [0, 11, 32], sizes = [1, 1, 32], strides = [1, 1, 1]} : vector<2x18x72xf32> to vector<1x1x32xf32>
    %135 = vector.shape_cast %134 : vector<1x1x32xf32> to vector<1x32xf32>
    %136 = vector.extract_strided_slice %0 {offsets = [1, 3, 0], sizes = [1, 1, 32], strides = [1, 1, 1]} : vector<2x18x72xf32> to vector<1x1x32xf32>
    %137 = vector.shape_cast %136 : vector<1x1x32xf32> to vector<1x32xf32>
    %138 = vector.extract_strided_slice %0 {offsets = [1, 3, 16], sizes = [1, 1, 32], strides = [1, 1, 1]} : vector<2x18x72xf32> to vector<1x1x32xf32>
    %139 = vector.shape_cast %138 : vector<1x1x32xf32> to vector<1x32xf32>
    %140 = vector.extract_strided_slice %0 {offsets = [1, 3, 32], sizes = [1, 1, 32], strides = [1, 1, 1]} : vector<2x18x72xf32> to vector<1x1x32xf32>
    %141 = vector.shape_cast %140 : vector<1x1x32xf32> to vector<1x32xf32>
    %142 = vector.extract_strided_slice %0 {offsets = [1, 7, 0], sizes = [1, 1, 32], strides = [1, 1, 1]} : vector<2x18x72xf32> to vector<1x1x32xf32>
    %143 = vector.shape_cast %142 : vector<1x1x32xf32> to vector<1x32xf32>
    %144 = vector.extract_strided_slice %0 {offsets = [1, 7, 16], sizes = [1, 1, 32], strides = [1, 1, 1]} : vector<2x18x72xf32> to vector<1x1x32xf32>
    %145 = vector.shape_cast %144 : vector<1x1x32xf32> to vector<1x32xf32>
    %146 = vector.extract_strided_slice %0 {offsets = [1, 7, 32], sizes = [1, 1, 32], strides = [1, 1, 1]} : vector<2x18x72xf32> to vector<1x1x32xf32>
    %147 = vector.shape_cast %146 : vector<1x1x32xf32> to vector<1x32xf32>
    %148 = vector.extract_strided_slice %0 {offsets = [1, 11, 0], sizes = [1, 1, 32], strides = [1, 1, 1]} : vector<2x18x72xf32> to vector<1x1x32xf32>
    %149 = vector.shape_cast %148 : vector<1x1x32xf32> to vector<1x32xf32>
    %150 = vector.extract_strided_slice %0 {offsets = [1, 11, 16], sizes = [1, 1, 32], strides = [1, 1, 1]} : vector<2x18x72xf32> to vector<1x1x32xf32>
    %151 = vector.shape_cast %150 : vector<1x1x32xf32> to vector<1x32xf32>
    %152 = vector.extract_strided_slice %0 {offsets = [1, 11, 32], sizes = [1, 1, 32], strides = [1, 1, 1]} : vector<2x18x72xf32> to vector<1x1x32xf32>
    %153 = vector.shape_cast %152 : vector<1x1x32xf32> to vector<1x32xf32>
    %154 = tpu.concatenate %119, %121, %123, %125, %127, %129, %131, %133, %135, %137, %139, %141, %143, %145, %147, %149 in 0 : vector<1x32xf32>, vector<1x32xf32>, vector<1x32xf32>, vector<1x32xf32>, vector<1x32xf32>, vector<1x32xf32>, vector<1x32xf32>, vector<1x32xf32>, vector<1x32xf32>, vector<1x32xf32>, vector<1x32xf32>, vector<1x32xf32>, vector<1x32xf32>, vector<1x32xf32>, vector<1x32xf32>, vector<1x32xf32> -> vector<16x32xf32>
    %155 = tpu.concatenate %151, %153 in 0 : vector<1x32xf32>, vector<1x32xf32> -> vector<2x32xf32>
    %156 = tpu.concatenate %154, %155 in 0 : vector<16x32xf32>, vector<2x32xf32> -> vector<18x32xf32>
    %157 = vector.extract_strided_slice %0 {offsets = [0, 4, 0], sizes = [1, 1, 32], strides = [1, 1, 1]} : vector<2x18x72xf32> to vector<1x1x32xf32>
    %158 = vector.shape_cast %157 : vector<1x1x32xf32> to vector<1x32xf32>
    %159 = vector.extract_strided_slice %0 {offsets = [0, 4, 16], sizes = [1, 1, 32], strides = [1, 1, 1]} : vector<2x18x72xf32> to vector<1x1x32xf32>
    %160 = vector.shape_cast %159 : vector<1x1x32xf32> to vector<1x32xf32>
    %161 = vector.extract_strided_slice %0 {offsets = [0, 4, 32], sizes = [1, 1, 32], strides = [1, 1, 1]} : vector<2x18x72xf32> to vector<1x1x32xf32>
    %162 = vector.shape_cast %161 : vector<1x1x32xf32> to vector<1x32xf32>
    %163 = vector.extract_strided_slice %0 {offsets = [0, 8, 0], sizes = [1, 1, 32], strides = [1, 1, 1]} : vector<2x18x72xf32> to vector<1x1x32xf32>
    %164 = vector.shape_cast %163 : vector<1x1x32xf32> to vector<1x32xf32>
    %165 = vector.extract_strided_slice %0 {offsets = [0, 8, 16], sizes = [1, 1, 32], strides = [1, 1, 1]} : vector<2x18x72xf32> to vector<1x1x32xf32>
    %166 = vector.shape_cast %165 : vector<1x1x32xf32> to vector<1x32xf32>
    %167 = vector.extract_strided_slice %0 {offsets = [0, 8, 32], sizes = [1, 1, 32], strides = [1, 1, 1]} : vector<2x18x72xf32> to vector<1x1x32xf32>
    %168 = vector.shape_cast %167 : vector<1x1x32xf32> to vector<1x32xf32>
    %169 = vector.extract_strided_slice %0 {offsets = [0, 12, 0], sizes = [1, 1, 32], strides = [1, 1, 1]} : vector<2x18x72xf32> to vector<1x1x32xf32>
    %170 = vector.shape_cast %169 : vector<1x1x32xf32> to vector<1x32xf32>
    %171 = vector.extract_strided_slice %0 {offsets = [0, 12, 16], sizes = [1, 1, 32], strides = [1, 1, 1]} : vector<2x18x72xf32> to vector<1x1x32xf32>
    %172 = vector.shape_cast %171 : vector<1x1x32xf32> to vector<1x32xf32>
    %173 = vector.extract_strided_slice %0 {offsets = [0, 12, 32], sizes = [1, 1, 32], strides = [1, 1, 1]} : vector<2x18x72xf32> to vector<1x1x32xf32>
    %174 = vector.shape_cast %173 : vector<1x1x32xf32> to vector<1x32xf32>
    %175 = vector.extract_strided_slice %0 {offsets = [1, 4, 0], sizes = [1, 1, 32], strides = [1, 1, 1]} : vector<2x18x72xf32> to vector<1x1x32xf32>
    %176 = vector.shape_cast %175 : vector<1x1x32xf32> to vector<1x32xf32>
    %177 = vector.extract_strided_slice %0 {offsets = [1, 4, 16], sizes = [1, 1, 32], strides = [1, 1, 1]} : vector<2x18x72xf32> to vector<1x1x32xf32>
    %178 = vector.shape_cast %177 : vector<1x1x32xf32> to vector<1x32xf32>
    %179 = vector.extract_strided_slice %0 {offsets = [1, 4, 32], sizes = [1, 1, 32], strides = [1, 1, 1]} : vector<2x18x72xf32> to vector<1x1x32xf32>
    %180 = vector.shape_cast %179 : vector<1x1x32xf32> to vector<1x32xf32>
    %181 = vector.extract_strided_slice %0 {offsets = [1, 8, 0], sizes = [1, 1, 32], strides = [1, 1, 1]} : vector<2x18x72xf32> to vector<1x1x32xf32>
    %182 = vector.shape_cast %181 : vector<1x1x32xf32> to vector<1x32xf32>
    %183 = vector.extract_strided_slice %0 {offsets = [1, 8, 16], sizes = [1, 1, 32], strides = [1, 1, 1]} : vector<2x18x72xf32> to vector<1x1x32xf32>
    %184 = vector.shape_cast %183 : vector<1x1x32xf32> to vector<1x32xf32>
    %185 = vector.extract_strided_slice %0 {offsets = [1, 8, 32], sizes = [1, 1, 32], strides = [1, 1, 1]} : vector<2x18x72xf32> to vector<1x1x32xf32>
    %186 = vector.shape_cast %185 : vector<1x1x32xf32> to vector<1x32xf32>
    %187 = vector.extract_strided_slice %0 {offsets = [1, 12, 0], sizes = [1, 1, 32], strides = [1, 1, 1]} : vector<2x18x72xf32> to vector<1x1x32xf32>
    %188 = vector.shape_cast %187 : vector<1x1x32xf32> to vector<1x32xf32>
    %189 = vector.extract_strided_slice %0 {offsets = [1, 12, 16], sizes = [1, 1, 32], strides = [1, 1, 1]} : vector<2x18x72xf32> to vector<1x1x32xf32>
    %190 = vector.shape_cast %189 : vector<1x1x32xf32> to vector<1x32xf32>
    %191 = vector.extract_strided_slice %0 {offsets = [1, 12, 32], sizes = [1, 1, 32], strides = [1, 1, 1]} : vector<2x18x72xf32> to vector<1x1x32xf32>
    %192 = vector.shape_cast %191 : vector<1x1x32xf32> to vector<1x32xf32>
    %193 = tpu.concatenate %158, %160, %162, %164, %166, %168, %170, %172, %174, %176, %178, %180, %182, %184, %186, %188 in 0 : vector<1x32xf32>, vector<1x32xf32>, vector<1x32xf32>, vector<1x32xf32>, vector<1x32xf32>, vector<1x32xf32>, vector<1x32xf32>, vector<1x32xf32>, vector<1x32xf32>, vector<1x32xf32>, vector<1x32xf32>, vector<1x32xf32>, vector<1x32xf32>, vector<1x32xf32>, vector<1x32xf32>, vector<1x32xf32> -> vector<16x32xf32>
    %194 = tpu.concatenate %190, %192 in 0 : vector<1x32xf32>, vector<1x32xf32> -> vector<2x32xf32>
    %195 = tpu.concatenate %193, %194 in 0 : vector<16x32xf32>, vector<2x32xf32> -> vector<18x32xf32>
    %196 = vector.extract_strided_slice %0 {offsets = [0, 5, 0], sizes = [1, 1, 32], strides = [1, 1, 1]} : vector<2x18x72xf32> to vector<1x1x32xf32>
    %197 = vector.shape_cast %196 : vector<1x1x32xf32> to vector<1x32xf32>
    %198 = vector.extract_strided_slice %0 {offsets = [0, 5, 16], sizes = [1, 1, 32], strides = [1, 1, 1]} : vector<2x18x72xf32> to vector<1x1x32xf32>
    %199 = vector.shape_cast %198 : vector<1x1x32xf32> to vector<1x32xf32>
    %200 = vector.extract_strided_slice %0 {offsets = [0, 5, 32], sizes = [1, 1, 32], strides = [1, 1, 1]} : vector<2x18x72xf32> to vector<1x1x32xf32>
    %201 = vector.shape_cast %200 : vector<1x1x32xf32> to vector<1x32xf32>
    %202 = vector.extract_strided_slice %0 {offsets = [0, 9, 0], sizes = [1, 1, 32], strides = [1, 1, 1]} : vector<2x18x72xf32> to vector<1x1x32xf32>
    %203 = vector.shape_cast %202 : vector<1x1x32xf32> to vector<1x32xf32>
    %204 = vector.extract_strided_slice %0 {offsets = [0, 9, 16], sizes = [1, 1, 32], strides = [1, 1, 1]} : vector<2x18x72xf32> to vector<1x1x32xf32>
    %205 = vector.shape_cast %204 : vector<1x1x32xf32> to vector<1x32xf32>
    %206 = vector.extract_strided_slice %0 {offsets = [0, 9, 32], sizes = [1, 1, 32], strides = [1, 1, 1]} : vector<2x18x72xf32> to vector<1x1x32xf32>
    %207 = vector.shape_cast %206 : vector<1x1x32xf32> to vector<1x32xf32>
    %208 = vector.extract_strided_slice %0 {offsets = [0, 13, 0], sizes = [1, 1, 32], strides = [1, 1, 1]} : vector<2x18x72xf32> to vector<1x1x32xf32>
    %209 = vector.shape_cast %208 : vector<1x1x32xf32> to vector<1x32xf32>
    %210 = vector.extract_strided_slice %0 {offsets = [0, 13, 16], sizes = [1, 1, 32], strides = [1, 1, 1]} : vector<2x18x72xf32> to vector<1x1x32xf32>
    %211 = vector.shape_cast %210 : vector<1x1x32xf32> to vector<1x32xf32>
    %212 = vector.extract_strided_slice %0 {offsets = [0, 13, 32], sizes = [1, 1, 32], strides = [1, 1, 1]} : vector<2x18x72xf32> to vector<1x1x32xf32>
    %213 = vector.shape_cast %212 : vector<1x1x32xf32> to vector<1x32xf32>
    %214 = vector.extract_strided_slice %0 {offsets = [1, 5, 0], sizes = [1, 1, 32], strides = [1, 1, 1]} : vector<2x18x72xf32> to vector<1x1x32xf32>
    %215 = vector.shape_cast %214 : vector<1x1x32xf32> to vector<1x32xf32>
    %216 = vector.extract_strided_slice %0 {offsets = [1, 5, 16], sizes = [1, 1, 32], strides = [1, 1, 1]} : vector<2x18x72xf32> to vector<1x1x32xf32>
    %217 = vector.shape_cast %216 : vector<1x1x32xf32> to vector<1x32xf32>
    %218 = vector.extract_strided_slice %0 {offsets = [1, 5, 32], sizes = [1, 1, 32], strides = [1, 1, 1]} : vector<2x18x72xf32> to vector<1x1x32xf32>
    %219 = vector.shape_cast %218 : vector<1x1x32xf32> to vector<1x32xf32>
    %220 = vector.extract_strided_slice %0 {offsets = [1, 9, 0], sizes = [1, 1, 32], strides = [1, 1, 1]} : vector<2x18x72xf32> to vector<1x1x32xf32>
    %221 = vector.shape_cast %220 : vector<1x1x32xf32> to vector<1x32xf32>
    %222 = vector.extract_strided_slice %0 {offsets = [1, 9, 16], sizes = [1, 1, 32], strides = [1, 1, 1]} : vector<2x18x72xf32> to vector<1x1x32xf32>
    %223 = vector.shape_cast %222 : vector<1x1x32xf32> to vector<1x32xf32>
    %224 = vector.extract_strided_slice %0 {offsets = [1, 9, 32], sizes = [1, 1, 32], strides = [1, 1, 1]} : vector<2x18x72xf32> to vector<1x1x32xf32>
    %225 = vector.shape_cast %224 : vector<1x1x32xf32> to vector<1x32xf32>
    %226 = vector.extract_strided_slice %0 {offsets = [1, 13, 0], sizes = [1, 1, 32], strides = [1, 1, 1]} : vector<2x18x72xf32> to vector<1x1x32xf32>
    %227 = vector.shape_cast %226 : vector<1x1x32xf32> to vector<1x32xf32>
    %228 = vector.extract_strided_slice %0 {offsets = [1, 13, 16], sizes = [1, 1, 32], strides = [1, 1, 1]} : vector<2x18x72xf32> to vector<1x1x32xf32>
    %229 = vector.shape_cast %228 : vector<1x1x32xf32> to vector<1x32xf32>
    %230 = vector.extract_strided_slice %0 {offsets = [1, 13, 32], sizes = [1, 1, 32], strides = [1, 1, 1]} : vector<2x18x72xf32> to vector<1x1x32xf32>
    %231 = vector.shape_cast %230 : vector<1x1x32xf32> to vector<1x32xf32>
    %232 = tpu.concatenate %197, %199, %201, %203, %205, %207, %209, %211, %213, %215, %217, %219, %221, %223, %225, %227 in 0 : vector<1x32xf32>, vector<1x32xf32>, vector<1x32xf32>, vector<1x32xf32>, vector<1x32xf32>, vector<1x32xf32>, vector<1x32xf32>, vector<1x32xf32>, vector<1x32xf32>, vector<1x32xf32>, vector<1x32xf32>, vector<1x32xf32>, vector<1x32xf32>, vector<1x32xf32>, vector<1x32xf32>, vector<1x32xf32> -> vector<16x32xf32>
    %233 = tpu.concatenate %229, %231 in 0 : vector<1x32xf32>, vector<1x32xf32> -> vector<2x32xf32>
    %234 = tpu.concatenate %232, %233 in 0 : vector<16x32xf32>, vector<2x32xf32> -> vector<18x32xf32>
    %235 = vector.extract_strided_slice %0 {offsets = [0, 6, 0], sizes = [1, 1, 32], strides = [1, 1, 1]} : vector<2x18x72xf32> to vector<1x1x32xf32>
    %236 = vector.shape_cast %235 : vector<1x1x32xf32> to vector<1x32xf32>
    %237 = vector.extract_strided_slice %0 {offsets = [0, 6, 16], sizes = [1, 1, 32], strides = [1, 1, 1]} : vector<2x18x72xf32> to vector<1x1x32xf32>
    %238 = vector.shape_cast %237 : vector<1x1x32xf32> to vector<1x32xf32>
    %239 = vector.extract_strided_slice %0 {offsets = [0, 6, 32], sizes = [1, 1, 32], strides = [1, 1, 1]} : vector<2x18x72xf32> to vector<1x1x32xf32>
    %240 = vector.shape_cast %239 : vector<1x1x32xf32> to vector<1x32xf32>
    %241 = vector.extract_strided_slice %0 {offsets = [0, 10, 0], sizes = [1, 1, 32], strides = [1, 1, 1]} : vector<2x18x72xf32> to vector<1x1x32xf32>
    %242 = vector.shape_cast %241 : vector<1x1x32xf32> to vector<1x32xf32>
    %243 = vector.extract_strided_slice %0 {offsets = [0, 10, 16], sizes = [1, 1, 32], strides = [1, 1, 1]} : vector<2x18x72xf32> to vector<1x1x32xf32>
    %244 = vector.shape_cast %243 : vector<1x1x32xf32> to vector<1x32xf32>
    %245 = vector.extract_strided_slice %0 {offsets = [0, 10, 32], sizes = [1, 1, 32], strides = [1, 1, 1]} : vector<2x18x72xf32> to vector<1x1x32xf32>
    %246 = vector.shape_cast %245 : vector<1x1x32xf32> to vector<1x32xf32>
    %247 = vector.extract_strided_slice %0 {offsets = [0, 14, 0], sizes = [1, 1, 32], strides = [1, 1, 1]} : vector<2x18x72xf32> to vector<1x1x32xf32>
    %248 = vector.shape_cast %247 : vector<1x1x32xf32> to vector<1x32xf32>
    %249 = vector.extract_strided_slice %0 {offsets = [0, 14, 16], sizes = [1, 1, 32], strides = [1, 1, 1]} : vector<2x18x72xf32> to vector<1x1x32xf32>
    %250 = vector.shape_cast %249 : vector<1x1x32xf32> to vector<1x32xf32>
    %251 = vector.extract_strided_slice %0 {offsets = [0, 14, 32], sizes = [1, 1, 32], strides = [1, 1, 1]} : vector<2x18x72xf32> to vector<1x1x32xf32>
    %252 = vector.shape_cast %251 : vector<1x1x32xf32> to vector<1x32xf32>
    %253 = vector.extract_strided_slice %0 {offsets = [1, 6, 0], sizes = [1, 1, 32], strides = [1, 1, 1]} : vector<2x18x72xf32> to vector<1x1x32xf32>
    %254 = vector.shape_cast %253 : vector<1x1x32xf32> to vector<1x32xf32>
    %255 = vector.extract_strided_slice %0 {offsets = [1, 6, 16], sizes = [1, 1, 32], strides = [1, 1, 1]} : vector<2x18x72xf32> to vector<1x1x32xf32>
    %256 = vector.shape_cast %255 : vector<1x1x32xf32> to vector<1x32xf32>
    %257 = vector.extract_strided_slice %0 {offsets = [1, 6, 32], sizes = [1, 1, 32], strides = [1, 1, 1]} : vector<2x18x72xf32> to vector<1x1x32xf32>
    %258 = vector.shape_cast %257 : vector<1x1x32xf32> to vector<1x32xf32>
    %259 = vector.extract_strided_slice %0 {offsets = [1, 10, 0], sizes = [1, 1, 32], strides = [1, 1, 1]} : vector<2x18x72xf32> to vector<1x1x32xf32>
    %260 = vector.shape_cast %259 : vector<1x1x32xf32> to vector<1x32xf32>
    %261 = vector.extract_strided_slice %0 {offsets = [1, 10, 16], sizes = [1, 1, 32], strides = [1, 1, 1]} : vector<2x18x72xf32> to vector<1x1x32xf32>
    %262 = vector.shape_cast %261 : vector<1x1x32xf32> to vector<1x32xf32>
    %263 = vector.extract_strided_slice %0 {offsets = [1, 10, 32], sizes = [1, 1, 32], strides = [1, 1, 1]} : vector<2x18x72xf32> to vector<1x1x32xf32>
    %264 = vector.shape_cast %263 : vector<1x1x32xf32> to vector<1x32xf32>
    %265 = vector.extract_strided_slice %0 {offsets = [1, 14, 0], sizes = [1, 1, 32], strides = [1, 1, 1]} : vector<2x18x72xf32> to vector<1x1x32xf32>
    %266 = vector.shape_cast %265 : vector<1x1x32xf32> to vector<1x32xf32>
    %267 = vector.extract_strided_slice %0 {offsets = [1, 14, 16], sizes = [1, 1, 32], strides = [1, 1, 1]} : vector<2x18x72xf32> to vector<1x1x32xf32>
    %268 = vector.shape_cast %267 : vector<1x1x32xf32> to vector<1x32xf32>
    %269 = vector.extract_strided_slice %0 {offsets = [1, 14, 32], sizes = [1, 1, 32], strides = [1, 1, 1]} : vector<2x18x72xf32> to vector<1x1x32xf32>
    %270 = vector.shape_cast %269 : vector<1x1x32xf32> to vector<1x32xf32>
    %271 = tpu.concatenate %236, %238, %240, %242, %244, %246, %248, %250, %252, %254, %256, %258, %260, %262, %264, %266 in 0 : vector<1x32xf32>, vector<1x32xf32>, vector<1x32xf32>, vector<1x32xf32>, vector<1x32xf32>, vector<1x32xf32>, vector<1x32xf32>, vector<1x32xf32>, vector<1x32xf32>, vector<1x32xf32>, vector<1x32xf32>, vector<1x32xf32>, vector<1x32xf32>, vector<1x32xf32>, vector<1x32xf32>, vector<1x32xf32> -> vector<16x32xf32>
    %272 = tpu.concatenate %268, %270 in 0 : vector<1x32xf32>, vector<1x32xf32> -> vector<2x32xf32>
    %273 = tpu.concatenate %271, %272 in 0 : vector<16x32xf32>, vector<2x32xf32> -> vector<18x32xf32>
    %274 = vector.extract_strided_slice %0 {offsets = [0, 7, 0], sizes = [1, 1, 32], strides = [1, 1, 1]} : vector<2x18x72xf32> to vector<1x1x32xf32>
    %275 = vector.shape_cast %274 : vector<1x1x32xf32> to vector<1x32xf32>
    %276 = vector.extract_strided_slice %0 {offsets = [0, 7, 16], sizes = [1, 1, 32], strides = [1, 1, 1]} : vector<2x18x72xf32> to vector<1x1x32xf32>
    %277 = vector.shape_cast %276 : vector<1x1x32xf32> to vector<1x32xf32>
    %278 = vector.extract_strided_slice %0 {offsets = [0, 7, 32], sizes = [1, 1, 32], strides = [1, 1, 1]} : vector<2x18x72xf32> to vector<1x1x32xf32>
    %279 = vector.shape_cast %278 : vector<1x1x32xf32> to vector<1x32xf32>
    %280 = vector.extract_strided_slice %0 {offsets = [0, 11, 0], sizes = [1, 1, 32], strides = [1, 1, 1]} : vector<2x18x72xf32> to vector<1x1x32xf32>
    %281 = vector.shape_cast %280 : vector<1x1x32xf32> to vector<1x32xf32>
    %282 = vector.extract_strided_slice %0 {offsets = [0, 11, 16], sizes = [1, 1, 32], strides = [1, 1, 1]} : vector<2x18x72xf32> to vector<1x1x32xf32>
    %283 = vector.shape_cast %282 : vector<1x1x32xf32> to vector<1x32xf32>
    %284 = vector.extract_strided_slice %0 {offsets = [0, 11, 32], sizes = [1, 1, 32], strides = [1, 1, 1]} : vector<2x18x72xf32> to vector<1x1x32xf32>
    %285 = vector.shape_cast %284 : vector<1x1x32xf32> to vector<1x32xf32>
    %286 = vector.extract_strided_slice %0 {offsets = [0, 15, 0], sizes = [1, 1, 32], strides = [1, 1, 1]} : vector<2x18x72xf32> to vector<1x1x32xf32>
    %287 = vector.shape_cast %286 : vector<1x1x32xf32> to vector<1x32xf32>
    %288 = vector.extract_strided_slice %0 {offsets = [0, 15, 16], sizes = [1, 1, 32], strides = [1, 1, 1]} : vector<2x18x72xf32> to vector<1x1x32xf32>
    %289 = vector.shape_cast %288 : vector<1x1x32xf32> to vector<1x32xf32>
    %290 = vector.extract_strided_slice %0 {offsets = [0, 15, 32], sizes = [1, 1, 32], strides = [1, 1, 1]} : vector<2x18x72xf32> to vector<1x1x32xf32>
    %291 = vector.shape_cast %290 : vector<1x1x32xf32> to vector<1x32xf32>
    %292 = vector.extract_strided_slice %0 {offsets = [1, 7, 0], sizes = [1, 1, 32], strides = [1, 1, 1]} : vector<2x18x72xf32> to vector<1x1x32xf32>
    %293 = vector.shape_cast %292 : vector<1x1x32xf32> to vector<1x32xf32>
    %294 = vector.extract_strided_slice %0 {offsets = [1, 7, 16], sizes = [1, 1, 32], strides = [1, 1, 1]} : vector<2x18x72xf32> to vector<1x1x32xf32>
    %295 = vector.shape_cast %294 : vector<1x1x32xf32> to vector<1x32xf32>
    %296 = vector.extract_strided_slice %0 {offsets = [1, 7, 32], sizes = [1, 1, 32], strides = [1, 1, 1]} : vector<2x18x72xf32> to vector<1x1x32xf32>
    %297 = vector.shape_cast %296 : vector<1x1x32xf32> to vector<1x32xf32>
    %298 = vector.extract_strided_slice %0 {offsets = [1, 11, 0], sizes = [1, 1, 32], strides = [1, 1, 1]} : vector<2x18x72xf32> to vector<1x1x32xf32>
    %299 = vector.shape_cast %298 : vector<1x1x32xf32> to vector<1x32xf32>
    %300 = vector.extract_strided_slice %0 {offsets = [1, 11, 16], sizes = [1, 1, 32], strides = [1, 1, 1]} : vector<2x18x72xf32> to vector<1x1x32xf32>
    %301 = vector.shape_cast %300 : vector<1x1x32xf32> to vector<1x32xf32>
    %302 = vector.extract_strided_slice %0 {offsets = [1, 11, 32], sizes = [1, 1, 32], strides = [1, 1, 1]} : vector<2x18x72xf32> to vector<1x1x32xf32>
    %303 = vector.shape_cast %302 : vector<1x1x32xf32> to vector<1x32xf32>
    %304 = vector.extract_strided_slice %0 {offsets = [1, 15, 0], sizes = [1, 1, 32], strides = [1, 1, 1]} : vector<2x18x72xf32> to vector<1x1x32xf32>
    %305 = vector.shape_cast %304 : vector<1x1x32xf32> to vector<1x32xf32>
    %306 = vector.extract_strided_slice %0 {offsets = [1, 15, 16], sizes = [1, 1, 32], strides = [1, 1, 1]} : vector<2x18x72xf32> to vector<1x1x32xf32>
    %307 = vector.shape_cast %306 : vector<1x1x32xf32> to vector<1x32xf32>
    %308 = vector.extract_strided_slice %0 {offsets = [1, 15, 32], sizes = [1, 1, 32], strides = [1, 1, 1]} : vector<2x18x72xf32> to vector<1x1x32xf32>
    %309 = vector.shape_cast %308 : vector<1x1x32xf32> to vector<1x32xf32>
    %310 = tpu.concatenate %275, %277, %279, %281, %283, %285, %287, %289, %291, %293, %295, %297, %299, %301, %303, %305 in 0 : vector<1x32xf32>, vector<1x32xf32>, vector<1x32xf32>, vector<1x32xf32>, vector<1x32xf32>, vector<1x32xf32>, vector<1x32xf32>, vector<1x32xf32>, vector<1x32xf32>, vector<1x32xf32>, vector<1x32xf32>, vector<1x32xf32>, vector<1x32xf32>, vector<1x32xf32>, vector<1x32xf32>, vector<1x32xf32> -> vector<16x32xf32>
    %311 = tpu.concatenate %307, %309 in 0 : vector<1x32xf32>, vector<1x32xf32> -> vector<2x32xf32>
    %312 = tpu.concatenate %310, %311 in 0 : vector<16x32xf32>, vector<2x32xf32> -> vector<18x32xf32>
    %313 = tpu.concatenate %39, %78, %117, %156, %195, %234, %273, %312 in 1 : vector<18x32xf32>, vector<18x32xf32>, vector<18x32xf32>, vector<18x32xf32>, vector<18x32xf32>, vector<18x32xf32>, vector<18x32xf32>, vector<18x32xf32> -> vector<18x256xf32>
    %314 = arith.truncf %313 : vector<18x256xf32> to vector<18x256xbf16>
    %c0_2 = arith.constant 0 : index
    %c0_3 = arith.constant 0 : index
    %315 = vector.load %arg2[%c0_2, %c0_3] : memref<256x32xbf16, #tpu.memory_space<vmem>>, vector<256x32xbf16>
    %cst = arith.constant dense<0.000000e+00> : vector<18x32xf32>
    %316 = tpu.matmul %314, %315, %cst {dimension_numbers = #tpu.dot_dimension_numbers<[1], [0], [0], [1], [0, 0, 1, 1], [], []>} : vector<18x256xbf16>, vector<256x32xbf16>, vector<18x32xf32> -> vector<18x32xf32>
    %c0_4 = arith.constant 0 : index
    %c0_5 = arith.constant 0 : index
    %317 = vector.load %arg3[%c0_4, %c0_5] : memref<1x32xf32, #tpu.memory_space<vmem>>, vector<1x32xf32>
    %318 = vector.broadcast %317 : vector<1x32xf32> to vector<18x32xf32>
    %319 = arith.addf %316, %318 : vector<18x32xf32>
    %cst_6 = arith.constant 0.000000e+00 : f32
    %320 = vector.broadcast %cst_6 : f32 to vector<18x32xf32>
    %321 = arith.maximumf %319, %320 : vector<18x32xf32>
    %cst_7 = arith.constant 0.000000e+00 : f32
    %322 = vector.broadcast %cst_7 : f32 to vector<2x32xf32>
    %323 = vector.extract_strided_slice %321 {offsets = [0, 0], sizes = [1, 32], strides = [1, 1]} : vector<18x32xf32> to vector<1x32xf32>
    %324 = vector.extract_strided_slice %321 {offsets = [9, 0], sizes = [1, 32], strides = [1, 1]} : vector<18x32xf32> to vector<1x32xf32>
    %325 = tpu.concatenate %323, %324 in 0 : vector<1x32xf32>, vector<1x32xf32> -> vector<2x32xf32>
    %326 = vector.extract_strided_slice %321 {offsets = [1, 0], sizes = [1, 32], strides = [1, 1]} : vector<18x32xf32> to vector<1x32xf32>
    %327 = vector.extract_strided_slice %321 {offsets = [10, 0], sizes = [1, 32], strides = [1, 1]} : vector<18x32xf32> to vector<1x32xf32>
    %328 = tpu.concatenate %326, %327 in 0 : vector<1x32xf32>, vector<1x32xf32> -> vector<2x32xf32>
    %329 = vector.extract_strided_slice %321 {offsets = [2, 0], sizes = [1, 32], strides = [1, 1]} : vector<18x32xf32> to vector<1x32xf32>
    %330 = vector.extract_strided_slice %321 {offsets = [11, 0], sizes = [1, 32], strides = [1, 1]} : vector<18x32xf32> to vector<1x32xf32>
    %331 = tpu.concatenate %329, %330 in 0 : vector<1x32xf32>, vector<1x32xf32> -> vector<2x32xf32>
    %332 = vector.extract_strided_slice %321 {offsets = [3, 0], sizes = [1, 32], strides = [1, 1]} : vector<18x32xf32> to vector<1x32xf32>
    %333 = vector.extract_strided_slice %321 {offsets = [12, 0], sizes = [1, 32], strides = [1, 1]} : vector<18x32xf32> to vector<1x32xf32>
    %334 = tpu.concatenate %332, %333 in 0 : vector<1x32xf32>, vector<1x32xf32> -> vector<2x32xf32>
    %335 = vector.extract_strided_slice %321 {offsets = [4, 0], sizes = [1, 32], strides = [1, 1]} : vector<18x32xf32> to vector<1x32xf32>
    %336 = vector.extract_strided_slice %321 {offsets = [13, 0], sizes = [1, 32], strides = [1, 1]} : vector<18x32xf32> to vector<1x32xf32>
    %337 = tpu.concatenate %335, %336 in 0 : vector<1x32xf32>, vector<1x32xf32> -> vector<2x32xf32>
    %338 = vector.extract_strided_slice %321 {offsets = [5, 0], sizes = [1, 32], strides = [1, 1]} : vector<18x32xf32> to vector<1x32xf32>
    %339 = vector.extract_strided_slice %321 {offsets = [14, 0], sizes = [1, 32], strides = [1, 1]} : vector<18x32xf32> to vector<1x32xf32>
    %340 = tpu.concatenate %338, %339 in 0 : vector<1x32xf32>, vector<1x32xf32> -> vector<2x32xf32>
    %341 = vector.extract_strided_slice %321 {offsets = [6, 0], sizes = [1, 32], strides = [1, 1]} : vector<18x32xf32> to vector<1x32xf32>
    %342 = vector.extract_strided_slice %321 {offsets = [15, 0], sizes = [1, 32], strides = [1, 1]} : vector<18x32xf32> to vector<1x32xf32>
    %343 = tpu.concatenate %341, %342 in 0 : vector<1x32xf32>, vector<1x32xf32> -> vector<2x32xf32>
    %344 = vector.extract_strided_slice %321 {offsets = [7, 0], sizes = [1, 32], strides = [1, 1]} : vector<18x32xf32> to vector<1x32xf32>
    %345 = vector.extract_strided_slice %321 {offsets = [16, 0], sizes = [1, 32], strides = [1, 1]} : vector<18x32xf32> to vector<1x32xf32>
    %346 = tpu.concatenate %344, %345 in 0 : vector<1x32xf32>, vector<1x32xf32> -> vector<2x32xf32>
    %347 = vector.extract_strided_slice %321 {offsets = [8, 0], sizes = [1, 32], strides = [1, 1]} : vector<18x32xf32> to vector<1x32xf32>
    %348 = vector.extract_strided_slice %321 {offsets = [17, 0], sizes = [1, 32], strides = [1, 1]} : vector<18x32xf32> to vector<1x32xf32>
    %349 = tpu.concatenate %347, %348 in 0 : vector<1x32xf32>, vector<1x32xf32> -> vector<2x32xf32>
    %350 = tpu.concatenate %322, %322, %322, %322, %322, %325, %328, %331, %322, %334, %337, %340, %322, %343, %346, %349 in 1 : vector<2x32xf32>, vector<2x32xf32>, vector<2x32xf32>, vector<2x32xf32>, vector<2x32xf32>, vector<2x32xf32>, vector<2x32xf32>, vector<2x32xf32>, vector<2x32xf32>, vector<2x32xf32>, vector<2x32xf32>, vector<2x32xf32>, vector<2x32xf32>, vector<2x32xf32>, vector<2x32xf32>, vector<2x32xf32> -> vector<2x512xf32>
    %351 = arith.truncf %350 : vector<2x512xf32> to vector<2x512xbf16>
    %c0_8 = arith.constant 0 : index
    %c0_9 = arith.constant 0 : index
    %352 = vector.load %arg4[%c0_8, %c0_9] : memref<512x64xbf16, #tpu.memory_space<vmem>>, vector<512x64xbf16>
    %cst_10 = arith.constant dense<0.000000e+00> : vector<2x64xf32>
    %353 = tpu.matmul %351, %352, %cst_10 {dimension_numbers = #tpu.dot_dimension_numbers<[1], [0], [0], [1], [0, 0, 1, 1], [], []>} : vector<2x512xbf16>, vector<512x64xbf16>, vector<2x64xf32> -> vector<2x64xf32>
    %c0_11 = arith.constant 0 : index
    %c0_12 = arith.constant 0 : index
    %354 = vector.load %arg5[%c0_11, %c0_12] : memref<1x64xf32, #tpu.memory_space<vmem>>, vector<1x64xf32>
    %355 = vector.broadcast %354 : vector<1x64xf32> to vector<2x64xf32>
    %356 = arith.addf %353, %355 : vector<2x64xf32>
    %cst_13 = arith.constant 0.000000e+00 : f32
    %357 = vector.broadcast %cst_13 : f32 to vector<2x64xf32>
    %358 = arith.maximumf %356, %357 : vector<2x64xf32>
    %cst_14 = arith.constant 0.000000e+00 : f32
    %359 = vector.broadcast %cst_14 : f32 to vector<2x64xf32>
    %360 = vector.extract_strided_slice %358 {offsets = [0, 0], sizes = [1, 64], strides = [1, 1]} : vector<2x64xf32> to vector<1x64xf32>
    %361 = vector.extract_strided_slice %358 {offsets = [1, 0], sizes = [1, 64], strides = [1, 1]} : vector<2x64xf32> to vector<1x64xf32>
    %362 = tpu.concatenate %360, %361 in 0 : vector<1x64xf32>, vector<1x64xf32> -> vector<2x64xf32>
    %363 = tpu.concatenate %359, %359, %359, %359, %362, %359, %359, %359, %359 in 1 : vector<2x64xf32>, vector<2x64xf32>, vector<2x64xf32>, vector<2x64xf32>, vector<2x64xf32>, vector<2x64xf32>, vector<2x64xf32>, vector<2x64xf32>, vector<2x64xf32> -> vector<2x576xf32>
    %364 = arith.truncf %363 : vector<2x576xf32> to vector<2x576xbf16>
    %c0_15 = arith.constant 0 : index
    %c0_16 = arith.constant 0 : index
    %365 = vector.load %arg6[%c0_15, %c0_16] : memref<576x64xbf16, #tpu.memory_space<vmem>>, vector<576x64xbf16>
    %cst_17 = arith.constant dense<0.000000e+00> : vector<2x64xf32>
    %366 = tpu.matmul %364, %365, %cst_17 {dimension_numbers = #tpu.dot_dimension_numbers<[1], [0], [0], [1], [0, 0, 1, 1], [], []>} : vector<2x576xbf16>, vector<576x64xbf16>, vector<2x64xf32> -> vector<2x64xf32>
    %c0_18 = arith.constant 0 : index
    %c0_19 = arith.constant 0 : index
    %367 = vector.load %arg7[%c0_18, %c0_19] : memref<1x64xf32, #tpu.memory_space<vmem>>, vector<1x64xf32>
    %368 = vector.broadcast %367 : vector<1x64xf32> to vector<2x64xf32>
    %369 = arith.addf %366, %368 : vector<2x64xf32>
    %cst_20 = arith.constant 0.000000e+00 : f32
    %370 = vector.broadcast %cst_20 : f32 to vector<2x64xf32>
    %371 = arith.maximumf %369, %370 : vector<2x64xf32>
    %c0_21 = arith.constant 0 : index
    %c0_22 = arith.constant 0 : index
    %372 = vector.load %arg8[%c0_21, %c0_22] : memref<2x64xf32, #tpu.memory_space<vmem>>, vector<2x64xf32>
    tpu.vector_store %arg8[%c0_21, %c0_22], %371 {strides = array<i32>} : memref<2x64xf32, #tpu.memory_space<vmem>>, vector<2x64xf32>,
    return
  }
  func.func @transform_0(%arg0: i32) -> (i32, i32, i32) {
    %c0_i32 = arith.constant 0 : i32
    %c0_i32_0 = arith.constant 0 : i32
    %c0_i32_1 = arith.constant 0 : i32
    return %arg0, %c0_i32, %c0_i32_0 : i32, i32, i32
  }
  func.func @transform_1(%arg0: i32) -> (i32, i32) {
    %c0_i32 = arith.constant 0 : i32
    %c0_i32_0 = arith.constant 0 : i32
    %c0_i32_1 = arith.constant 0 : i32
    return %c0_i32, %c0_i32_0 : i32, i32
  }
  func.func @transform_2(%arg0: i32) -> (i32, i32) {
    %c0_i32 = arith.constant 0 : i32
    %c0_i32_0 = arith.constant 0 : i32
    %c0_i32_1 = arith.constant 0 : i32
    return %c0_i32, %c0_i32_0 : i32, i32
  }
  func.func @transform_3(%arg0: i32) -> (i32, i32) {
    %c0_i32 = arith.constant 0 : i32
    %c0_i32_0 = arith.constant 0 : i32
    %c0_i32_1 = arith.constant 0 : i32
    return %c0_i32, %c0_i32_0 : i32, i32
  }
  func.func @transform_4(%arg0: i32) -> (i32, i32) {
    %c0_i32 = arith.constant 0 : i32
    %c0_i32_0 = arith.constant 0 : i32
    %c0_i32_1 = arith.constant 0 : i32
    return %c0_i32, %c0_i32_0 : i32, i32
  }
  func.func @transform_5(%arg0: i32) -> (i32, i32) {
    %c0_i32 = arith.constant 0 : i32
    %c0_i32_0 = arith.constant 0 : i32
    %c0_i32_1 = arith.constant 0 : i32
    return %c0_i32, %c0_i32_0 : i32, i32
  }
  func.func @transform_6(%arg0: i32) -> (i32, i32) {
    %c0_i32 = arith.constant 0 : i32
    %c0_i32_0 = arith.constant 0 : i32
    %c0_i32_1 = arith.constant 0 : i32
    return %c0_i32, %c0_i32_0 : i32, i32
  }
  func.func @transform_7(%arg0: i32) -> (i32, i32) {
    %c0_i32 = arith.constant 0 : i32
    %c0_i32_0 = arith.constant 0 : i32
    return %arg0, %c0_i32 : i32, i32
  }
}

</mosaic_0001>

<bundles_post_ra>
// kernel: cnn_encoder_forward.1
= control target key start
LH: loop header
LB: loop body
LE: loop exit
PB: predicated region body
PF: predicated region fallthrough
CT: control target
= control target key end

     0   :  { %s2138_s30 = smov 112   ;;  %s2139_s10 = smov 96   ;;  %s3048_s0 = inlined_call_operand.vmem [shape: f32[2,18,72], index: 0, kind: input, shape index: {}]   ;;  %s3049_s1 = inlined_call_operand.vmem [shape: bf16[256,32], index: 1, kind: input, shape index: {}]   ;;  %s3050_s2 = inlined_call_operand.vmem [shape: f32[1,32], index: 2, kind: input, shape index: {}]   ;;  %s3051_s3 = inlined_call_operand.vmem [shape: bf16[512,64], index: 3, kind: input, shape index: {}]   ;;  %s3052_s4 = inlined_call_operand.vmem [shape: f32[1,64], index: 4, kind: input, shape index: {}]   ;;  %s3053_s5 = inlined_call_operand.vmem [shape: bf16[576,64], index: 5, kind: input, shape index: {}]   ;;  %s3054_s6 = inlined_call_operand.vmem [shape: f32[1,64], index: 6, kind: input, shape index: {}]   ;;  %s3055_s7 = inlined_call_operand.hbm [shape: f32[2,64], index: 7, kind: output, shape index: {}]  }
   0x1   :  { %v2189_v0 = vld [vmem:[%s3048_s0 + $0x20] sm:$0xff]  ;;  %v2211_v6 = vld [vmem:[%s3048_s0 + $0x8] sm:$0xff]  ;;  %v2244_v17 = vld [vmem:[%s3048_s0 + $0x18] sm:$0xff] }
   0x2   :  { %v2194_v1 = vld [vmem:[%s3048_s0] sm:$0xff]  ;;  %v2197_v2 = vrot.slane %v2189_v0, 4  ;;  %v2200_v3 = vrot.slane %v2189_v0, 2  ;;  %v2203_v4 = vrot.slane %v2189_v0, 6  ;;  %v2206_v5 = vrot.slane %v2189_v0, 1 }
   0x3   :  { %v2214_v7 = vrot.slane %v2189_v0, 5  ;;  %v2217_v8 = vrot.slane %v2194_v1, 4  ;;  %v2224_v11 = vrot.slane %v2211_v6, 1  ;;  %v2227_v12 = vrot.slane %v2211_v6, 5 }
   0x4   :  { %v1803_v9 = vpack.i.bf16 %v2189_v0, %v2197_v2  ;;  %v1813_v10 = vpack.i.bf16 %v2200_v3, %v2203_v4  ;;  %v2236_v15 = vrot.slane %v2194_v1, 3  ;;  %v2239_v16 = vrot.slane %v2211_v6, 6 }
   0x5   :  { %v1808_v13 = vpack.i.bf16 %v2206_v5, %v2214_v7  ;;  %v1818_v14 = vpack.i.bf16 %v2194_v1, %v2217_v8  ;;  %v2247_v18 = vrot.slane %v2244_v17, 3  ;;  %v285_v19 = vrot.slane %v2194_v1, 5 }
   0x6   :  { %1804 = vrot.lane.b32.xlu0 %v1803_v9, %s2138_s30  ;;  %1814 = vrot.lane.b32.xlu1 %v1813_v10, %s2138_s30  ;;  %v1823_v20 = vpack.i.bf16 %v2224_v11, %v2227_v12  ;;  %v1828_v21 = vpack.i.bf16 %v2239_v16, %v2236_v15  ;;  %v2257_v22 = vrot.slane %v2194_v1, 7  ;;  %v2260_v23 = vrot.slane %v2211_v6, 2 }
   0x7   :  { %v2263_v24 = vrot.slane %v2194_v1, 1  ;;  %v1833_v25 = vpack.i.bf16 %v285_v19, %v2247_v18  ;;  %v3058_v27 = vrot.slane %v2244_v17, 7  ;;  %v2274_v28 = vrot.slane %v2244_v17, 2 }
   0x8   :  { %v1838_v26 = vpack.i.bf16 %v2260_v23, %v2257_v22  ;;  %v2277_v29 = vrot.slane %v2194_v1, 6  ;;  %v2280_v30 = vrot.slane %v2244_v17, 4  ;;  %v2290_v33 = vrot.slane %v2244_v17, 6 }
   0x9   :  { %v1843_v31 = vpack.i.bf16 %v2263_v24, %v3058_v27  ;;  %v1848_v32 = vpack.i.bf16 %v2217_v8, %v2274_v28  ;;  %v2293_v34 = vrot.slane %v2211_v6, 7  ;;  %v2302_v37 = vrot.slane %v2211_v6, 3 }
   0xa   :  { %1809 = vrot.lane.b32.xlu0 %v1808_v13, %s2138_s30  ;;  %1819 = vrot.lane.b32.xlu1 %v1818_v14, %s2138_s30  ;;  %v1853_v35 = vpack.i.bf16 %v2277_v29, %v2280_v30  ;;  %v2305_v38 = vrot.slane %v2194_v1, 2  ;;  %v2314_v41 = vrot.slane %v2244_v17, 5  ;;  %v2321_v43 = vrot.slane %v2244_v17, 1 }
   0xb   :  { %v1858_v36 = vpack.i.bf16 %v2290_v33, %v2293_v34  ;;  %v1863_v39 = vpack.i.bf16 %v2302_v37, %v2194_v1  ;;  %v2328_v45 = vrot.slane %v2211_v6, 4  ;;  %v2331_v46 = vrot.slane %v2189_v0, 3 }
   0xc   :  { %v1868_v40 = vpack.i.bf16 %v2305_v38, %v2244_v17  ;;  %v1873_v42 = vpack.i.bf16 %v2314_v41, %v2227_v12  ;;  %v1888_v44 = vpack.i.bf16 %v2239_v16, %v2321_v43  ;;  %v1903_v49 = vpack.i.bf16 %v2236_v15, %v2293_v34 }
   0xd   :  { %v1893_v47 = vpack.i.bf16 %v2280_v30, %v2328_v45  ;;  %v1898_v48 = vpack.i.bf16 %v2331_v46, %v2244_v17  ;;  %v1908_v50 = vpack.i.bf16 %v2305_v38, %v2197_v2  ;;  %v1913_v51 = vpack.i.bf16 %v2274_v28, %v2260_v23 }
   0xe   :  { %1824 = vrot.lane.b32.xlu0 %v1823_v20, %s2139_s10  ;;  %1829 = vrot.lane.b32.xlu1 %v1828_v21, %s2139_s10  ;;  %v1918_v52 = vpack.i.bf16 %v2321_v43, %v2214_v7  ;;  %v1923_v53 = vpack.i.bf16 %v2211_v6, %v2302_v37  ;;  %v1928_v54 = vpack.i.bf16 %v2331_v46, %v2328_v45 }
  0x12   :  { %1834 = vrot.lane.b32.xlu0 %v1833_v25, %s2138_s30  ;;  %1839 = vrot.lane.b32.xlu1 %v1838_v26, %s2139_s10 }
  0x16   :  { %1844 = vrot.lane.b32.xlu0 %v1843_v31, %s2138_s30  ;;  %1849 = vrot.lane.b32.xlu1 %v1848_v32, %s2139_s10 }
  0x1a   :  { %1854 = vrot.lane.b32.xlu0 %v1853_v35, %s2138_s30  ;;  %1859 = vrot.lane.b32.xlu1 %v1858_v36, %s2139_s10 }
  0x1e   :  { %1864 = vrot.lane.b32.xlu0 %v1863_v39, %s2139_s10  ;;  %1869 = vrot.lane.b32.xlu1 %v1868_v40, %s2138_s30 }
  0x22   :  { %1874 = vrot.lane.b32.xlu0 %v1873_v42, %s2138_s30  ;;  %1879 = vrot.lane.b32.xlu1 %v1833_v25, %s2139_s10 }
  0x26   :  { %1884 = vrot.lane.b32.xlu0 %v1843_v31, %s2139_s10  ;;  %1889 = vrot.lane.b32.xlu1 %v1888_v44, %s2138_s30 }
  0x2a   :  { %1894 = vrot.lane.b32.xlu0 %v1893_v47, %s2139_s10  ;;  %1899 = vrot.lane.b32.xlu1 %v1898_v48, %s2139_s10 }
  0x2e   :  { %1904 = vrot.lane.b32.xlu0 %v1903_v49, %s2138_s30  ;;  %1909 = vrot.lane.b32.xlu1 %v1908_v50, %s2139_s10 }
  0x32   :  { %1914 = vrot.lane.b32.xlu0 %v1913_v51, %s2138_s30  ;;  %1919 = vrot.lane.b32.xlu1 %v1918_v52, %s2139_s10 }
  0x36   :  { %1924 = vrot.lane.b32.xlu0 %v1923_v53, %s2138_s30  ;;  %1929 = vrot.lane.b32.xlu1 %v1928_v54, %s2138_s30 }
  0x37   :  { %12 = vsyncpa [#allocation3], 0  ;;  %vm79_vm0 = vcmask 1040384   ;;  %v2364_v57 = vrot.slane %v2189_v0, 7  ;;  %v1948_v39 = vpack.i.bf16 %v2290_v33, %v2257_v22  ;;  %v2028_v40 = vld [vmem:[%s3049_s1 + $0x40] sm:$0xff]   ;;  %v2030_v44 = vld [vmem:[%s3049_s1 + $0x48] sm:$0xff]   ;;  %v1958_v52 = vpack.i.bf16 %v2200_v3, %v2314_v41 }
  0x38   :  { %v2029_v42 = vld [vmem:[%s3049_s1] sm:$0xff]   ;;  %1662 = vmatprep.subr.bf16.mxu0 %v2028_v40  ;;  %v1953_v53 = vpack.i.bf16 %v2277_v29, %v2211_v6  ;;  %vm81_vm1 = vcmask 1041408   ;;  %vm83_vm2 = vcmask 1042432   ;;  %vm85_vm3 = vcmask 1043456   ;;  %s2140_s12 = smov 32   ;;  %s2141_s19 = smov 64  }
  0x39   :  { %1663 = vmatpush3.bf16.msra.mxu0 %v2029_v42  ;;  %vm87_vm4 = vcmask 1044480   ;;  %vm89_vm5 = vcmask 1045504   ;;  %vm91_vm6 = vcmask 1046528   ;;  %vm491_vm7 = vcmask 261120   ;;  %s2145_s16 = smov [#allocation2]  }
  0x3a   :  { %1664 = vmatprep.subr.bf16.mxu0 %v2030_v44  ;;  %vm495_vm8 = vcmask 523264   ;;  %vm499_vm9 = vcmask 785408   ;;  %vm2144_vm10 = vmmov 0   ;;  %s1564_s17 = sshll.u32 %s2145_s16, 4  ;;  %vm1556_vm12 = vcmask 517120   ;;  %s1565_s17 = int_to_ptr.vmem [resolvable:$true] %s1564_s17 }
  0x3b   :  { %vm1659_vm11 = vmpackc.low %vm495_vm8, %vm495_vm8  ;;  %s2114_s18 = scalar_lea.vmem %s1565_s17, 32  ;;  %p2119_p1 = scmp.lt.s32.totalorder %s1565_s17, %s1565_s17 }
  0x3c   :  { %p2115_p0 = scmp.ne.s32.totalorder %s1565_s17, %s2114_s18  ;;  %p2120_p2 = scmp.lt.s32.totalorder %s2114_s18, %s2114_s18 }
  0x3e   :  { %p2121_p3 = por %p2120_p2, %p2119_p1 }
  0x40   :  { %p2122_p4 = pnand %p2121_p3, %p2115_p0 }
  0x78   :  { %v2359_v55 = vpop.permute.xlu0 %1804  ;;  %v2361_v56 = vpop.permute.xlu1 %1814 }
  0x79   :  { %v1806_v58 = vunpack.i.l.bf16 %v2359_v55  ;;  %v1816_v59 = vunpack.i.l.bf16 %v2361_v56  ;;  %v1807_v60 = vunpack.i.h.bf16 %v2359_v55  ;;  %v1817_v36 = vunpack.i.h.bf16 %v2361_v56 }
  0x7b   :  { %v331_v61 = vsel %vm79_vm0, %v2214_v7, %v1806_v58  ;;  %v421_v14 = vsel %vm79_vm0, %v2364_v57, %v1816_v59  ;;  %v152_v21 = vsel %vm79_vm0, %v2206_v5, %v1807_v60  ;;  %v246_v50 = vsel %vm79_vm0, %v2331_v46, %v1817_v36 }
  0x7c   :  { %v2373_v62 = vpop.permute.xlu0 %1809  ;;  %v2375_v63 = vpop.permute.xlu1 %1819  ;;  %v1933_v9 = vpack.i.bf16 %v331_v61, %v2364_v57 }
  0x7d   :  { %v1812_v10 = vunpack.i.h.bf16 %v2373_v62  ;;  %v1811_v13 = vunpack.i.l.bf16 %v2373_v62  ;;  %v3057_v51 = vunpack.i.h.bf16 %v2375_v63  ;;  %v2035_v62 = vld [vmem:[%s3049_s1 + $0x18] sm:$0xff]  }
  0x7e   :  { %1934 = vrot.lane.b32.xlu0 %v1933_v9, %s2138_s30  ;;  %v1821_v9 = vunpack.i.l.bf16 %v2375_v63 }
  0x7f   :  { %v199_v20 = vsel %vm79_vm0, %v2200_v3, %v1812_v10  ;;  %v376_v25 = vsel %vm79_vm0, %v2203_v4, %v1811_v13 }
  0x80   :  { %v2393_v26 = vpop.permute.xlu0 %1824  ;;  %v2395_v31 = vpop.permute.xlu1 %1829  ;;  %v1943_v32 = vpack.i.bf16 %v421_v14, %v199_v20  ;;  %v1938_v35 = vpack.i.bf16 %v376_v25, %v152_v21  ;;  %v135_v20 = vsel %vm79_vm0, %v2263_v24, %v3057_v51  ;;  %v317_v42 = vsel %vm79_vm0, %v285_v19, %v1821_v9 }
  0x81   :  { %v1826_v49 = vunpack.i.l.bf16 %v2393_v26  ;;  %v1827_v21 = vunpack.i.h.bf16 %v2393_v26 }
  0x82   :  { %1944 = vrot.lane.b32.xlu0 %v1943_v32, %s2138_s30  ;;  %1939 = vrot.lane.b32.xlu1 %v1938_v35, %s2138_s30  ;;  %v3060_v35 = vunpack.i.h.bf16 %v2395_v31 }
  0x83   :  { %v324_v10 = vsel %vm79_vm0, %v1826_v49, %v2280_v30  ;;  %v1831_v30 = vunpack.i.l.bf16 %v2395_v31 }
  0x84   :  { %v1835_v47 = vpop.permute.xlu0 %1834  ;;  %v2411_v48 = vpop.permute.xlu1 %1839  ;;  %v369_v9 = vsel %vm79_vm0, %v3060_v35, %v2314_v41 }
  0x85   :  { %v1836_v54 = vunpack.i.l.bf16 %v1835_v47  ;;  %v3056_v14 = vunpack.i.l.bf16 %v2411_v48  ;;  %v1837_v25 = vunpack.i.h.bf16 %v1835_v47  ;;  %v1842_v1 = vunpack.i.h.bf16 %v2411_v48 }
  0x86   :  { %1949 = vrot.lane.b32.xlu0 %v1948_v39, %s2138_s30  ;;  %248 = vrot.lane.b32.xlu1 %v246_v50, %s2138_s30 }
  0x87   :  { %v325_v36 = vsel %vm81_vm1, %v324_v10, %v1836_v54  ;;  %v136_v44 = vsel %vm81_vm1, %v135_v20, %v3056_v14  ;;  %v362_v54 = vsel %vm79_vm0, %v2277_v29, %v1837_v25  ;;  %v318_v10 = vsel %vm81_vm1, %v317_v42, %v1831_v30 }
  0x88   :  { %v2423_v60 = vpop.permute.xlu0 %1844  ;;  %v1850_v61 = vpop.permute.xlu1 %1849  ;;  %v137_v20 = vsel %vm83_vm2, %v136_v44, %v2305_v38  ;;  %v189_v51 = vsel %vm79_vm0, %v1842_v1, %v2321_v43  ;;  %v319_v27 = vsel %vm83_vm2, %v318_v10, %v2239_v16 }
  0x89   :  { %v1851_v32 = vunpack.i.l.bf16 %v1850_v61  ;;  %v1847_v47 = vunpack.i.h.bf16 %v2423_v60  ;;  %v3059_v50 = vunpack.i.l.bf16 %v2423_v60 }
  0x8a   :  { %1959 = vrot.lane.b32.xlu0 %v1958_v52, %s2139_s10  ;;  %1954 = vrot.lane.b32.xlu1 %v1953_v53, %s2139_s10  ;;  %v142_v52 = vsel %vm79_vm0, %v1827_v21, %v2244_v17  ;;  %v1852_v53 = vunpack.i.h.bf16 %v1850_v61 }
  0x8b   :  { %v326_v19 = vsel %vm83_vm2, %v325_v36, %v1851_v32  ;;  %v182_v25 = vsel %vm79_vm0, %v2305_v38, %v1847_v47  ;;  %v143_v32 = vsel %vm81_vm1, %v142_v52, %v3059_v50  ;;  %v138_v38 = vsel %vm85_vm3, %v137_v20, %v1847_v47 }
  0x8c   :  { %v1855_v39 = vpop.permute.xlu0 %1854  ;;  %v2441_v40 = vpop.permute.xlu1 %1859  ;;  %v363_v30 = vsel %vm81_vm1, %v362_v54, %v1852_v53  ;;  %v327_v42 = vsel %vm85_vm3, %v326_v19, %v2214_v7 }
  0x8d   :  { %v3061_v61 = vunpack.i.h.bf16 %v2441_v40  ;;  %v1856_v36 = vunpack.i.l.bf16 %v1855_v39  ;;  %v1857_v44 = vunpack.i.h.bf16 %v1855_v39  ;;  %v1861_v14 = vunpack.i.l.bf16 %v2441_v40 }
  0x8e   :  { %v364_v47 = vsel %vm83_vm2, %v363_v30, %v2293_v34  ;;  %v328_v10 = vsel %vm87_vm4, %v327_v42, %v1806_v58 }
  0x8f   :  { %v144_v52 = vsel %vm83_vm2, %v143_v32, %v3061_v61  ;;  %v370_v35 = vsel %vm81_vm1, %v369_v9, %v1856_v36  ;;  %v407_v20 = vsel %vm79_vm0, %v2257_v22, %v1857_v44 }
  0x90   :  { %v2465_v21 = vpop.permute.xlu0 %1864  ;;  %v1870_v29 = vpop.permute.xlu1 %1869  ;;  %v145_v36 = vsel %vm85_vm3, %v144_v52, %v2321_v43 }
  0x91   :  { %v1866_v41 = vunpack.i.l.bf16 %v2465_v21  ;;  %v1872_v54 = vunpack.i.h.bf16 %v1870_v29  ;;  %v1871_v19 = vunpack.i.l.bf16 %v1870_v29  ;;  %v1867_v29 = vunpack.i.h.bf16 %v2465_v21 }
  0x93   :  { %v183_v53 = vsel %vm81_vm1, %v182_v25, %v1866_v41  ;;  %v414_v25 = vsel %vm79_vm0, %v1861_v14, %v2290_v33  ;;  %v139_v61 = vsel %vm87_vm4, %v138_v38, %v1866_v41  ;;  %v229_v58 = vsel %vm79_vm0, %v2236_v15, %v1872_v54 }
  0x94   :  { %v2486_v39 = vpop.permute.xlu0 %1874  ;;  %v1880_v50 = vpop.permute.xlu1 %1879  ;;  %v184_v9 = vsel %vm83_vm2, %v183_v53, %v2236_v15  ;;  %v190_v22 = vsel %vm81_vm1, %v189_v51, %v1871_v19  ;;  %v2031_v15 = vld [vmem:[%s3049_s1 + $0x8] sm:$0xff]   ;;  %v236_v51 = vsel %vm79_vm0, %v1867_v29, %v2274_v28  ;;  %v146_v38 = vsel %vm87_vm4, %v145_v36, %v1871_v19 }
  0x95   :  { %v1882_v1 = vunpack.i.h.bf16 %v1880_v50  ;;  %v1881_v32 = vunpack.i.l.bf16 %v1880_v50  ;;  %v1876_v55 = vunpack.i.l.bf16 %v2486_v39  ;;  %v1877_v33 = vunpack.i.h.bf16 %v2486_v39  ;;  %1665 = vmatpush3.bf16.msra.mxu0 %v2031_v15 }
  0x96   :  { %v2525_v52 = vsel %vm89_vm5, %v139_v61, %v2302_v37 }
  0x97   :  { %v371_v14 = vsel %vm83_vm2, %v370_v35, %v1881_v32  ;;  %v408_v41 = vsel %vm81_vm1, %v407_v20, %v1882_v1  ;;  %v185_v35 = vsel %vm85_vm3, %v184_v9, %v1872_v54  ;;  %v320_v53 = vsel %vm85_vm3, %v319_v27, %v1876_v55  ;;  %v2032_v54 = vld [vmem:[%s3049_s1 + $0x50] sm:$0xff]  }
  0x98   :  { %v1885_v50 = vpop.permute.xlu0 %1884  ;;  %v2510_v30 = vpop.permute.xlu1 %1889  ;;  %v372_v1 = vsel %vm85_vm3, %v371_v14, %v2203_v4  ;;  %v415_v19 = vsel %vm81_vm1, %v414_v25, %v1877_v33  ;;  %v409_v36 = vsel %vm83_vm2, %v408_v41, %v2211_v6  ;;  %1666 = vmatprep.subr.bf16.mxu0 %v2032_v54 }
  0x99   :  { %v1887_v42 = vunpack.i.h.bf16 %v1885_v50  ;;  %v1886_v44 = vunpack.i.l.bf16 %v1885_v50  ;;  %v1892_v43 = vunpack.i.h.bf16 %v2510_v30  ;;  %v1891_v32 = vunpack.i.l.bf16 %v2510_v30 }
  0x9b   :  { %v191_v20 = vsel %vm83_vm2, %v190_v22, %v1886_v44  ;;  %v230_v37 = vsel %vm81_vm1, %v229_v58, %v1887_v42  ;;  %v365_v27 = vsel %vm85_vm3, %v364_v47, %v1892_v43  ;;  %v2033_v47 = vld [vmem:[%s3049_s1 + $0x10] sm:$0xff]   ;;  %v147_v58 = vsel %vm89_vm5, %v146_v38, %v1886_v44 }
  0x9c   :  { %v1895_v61 = vpop.permute.xlu0 %1894  ;;  %v2542_v9 = vpop.permute.xlu1 %1899  ;;  %v192_v22 = vsel %vm85_vm3, %v191_v20, %v2274_v28  ;;  %v366_v14 = vsel %vm87_vm4, %v365_v27, %v1826_v49  ;;  %v186_v50 = vsel %vm87_vm4, %v185_v35, %v1887_v42  ;;  %v373_v28 = vsel %vm87_vm4, %v372_v1, %v1811_v13  ;;  %1667 = vmatpush3.bf16.msra.mxu0 %v2033_v47  ;;  %v2034_v42 = vld [vmem:[%s3049_s1 + $0x58] sm:$0xff]  }
  0x9d   :  { %v1897_v25 = vunpack.i.h.bf16 %v1895_v61  ;;  %v1896_v33 = vunpack.i.l.bf16 %v1895_v61  ;;  %v1902_v41 = vunpack.i.h.bf16 %v2542_v9  ;;  %v237_v26 = vsel %vm81_vm1, %v236_v51, %v1891_v32  ;;  %1668 = vmatprep.subr.bf16.mxu0 %v2034_v42 }
  0x9e   :  { %v231_v20 = vsel %vm83_vm2, %v230_v37, %v2217_v8  ;;  %v2572_v13 = vsel %vm87_vm4, %v192_v22, %v1891_v32  ;;  %v1901_v44 = vunpack.i.l.bf16 %v2542_v9  ;;  %v2590_v61 = vsel %vm91_vm6, %v147_v58, %v2200_v3  ;;  %v2037_v3 = vld [vmem:[%s3049_s1 + $0x20] sm:$0xff]   ;;  %v2042_v9 = vld [vmem:[%s3049_s1 + $0x78] sm:$0xff]  }
  0x9f   :  { %v321_v49 = vsel %vm87_vm4, %v320_v53, %v1896_v33  ;;  %v416_v15 = vsel %vm83_vm2, %v415_v19, %v1897_v25  ;;  %v329_v51 = vsel %vm89_vm5, %v328_v10, %v1902_v41  ;;  %v367_v53 = vsel %vm89_vm5, %v366_v14, %v2211_v6 }
  0xa0   :  { %v1905_v35 = vpop.permute.xlu0 %1904  ;;  %v2576_v38 = vpop.permute.xlu1 %1909  ;;  %v417_v1 = vsel %vm85_vm3, %v416_v15, %v2364_v57  ;;  %v273_v32 = vsel %vm79_vm0, %v1896_v33, %v2247_v18  ;;  %v322_v10 = vsel %vm89_vm5, %v321_v49, %v2293_v34  ;;  %v330_v25 = vsel %vm91_vm6, %v329_v51, %v2203_v4  ;;  %1669 = vmatpush3.bf16.msra.mxu0 %v2035_v62  ;;  %v2036_v33 = vld [vmem:[%s3049_s1 + $0x60] sm:$0xff]  }
  0xa1   :  { %v1907_v54 = vunpack.i.h.bf16 %v1905_v35  ;;  %v1906_v19 = vunpack.i.l.bf16 %v1905_v35  ;;  %v1911_v37 = vunpack.i.l.bf16 %v2576_v38  ;;  %v1912_v27 = vunpack.i.h.bf16 %v2576_v38  ;;  %1670 = vmatprep.subr.bf16.mxu0 %v2036_v33  ;;  %v2038_v35 = vld [vmem:[%s3049_s1 + $0x68] sm:$0xff]   ;;  %v2043_v38 = vld [vmem:[%s3049_s1 + $0x38] sm:$0xff]  }
  0xa2   :  { %v418_v4 = vsel %vm87_vm4, %v417_v1, %v1816_v59  ;;  %v323_v58 = vsel %vm91_vm6, %v322_v10, %v1892_v43  ;;  %v3062_v41 = vunpack.i.h.bf16 %v2395_v31  ;;  %v187_v51 = vsel %vm89_vm5, %v186_v50, %v2328_v45  ;;  %v2039_v45 = vld [vmem:[%s3049_s1 + $0x28] sm:$0xff]  }
  0xa3   :  { %v266_v6 = vsel %vm79_vm0, %v2217_v8, %v1907_v54  ;;  %v410_v22 = vsel %vm85_vm3, %v409_v36, %v1906_v19  ;;  %v374_v14 = vsel %vm89_vm5, %v373_v28, %v1911_v37  ;;  %v238_v8 = vsel %vm83_vm2, %v237_v26, %v1901_v44 }
  0xa4   :  { %v267_v34 = vsel %vm81_vm1, %v266_v6, %v1912_v27  ;;  %v1915_v36 = vpop.permute.xlu0 %1914  ;;  %v2610_v47 = vpop.permute.xlu1 %1919  ;;  %v411_v28 = vsel %vm87_vm4, %v410_v22, %v3062_v41  ;;  %v1968_v62 = vpack.i.bf16 %v330_v25, %v323_v58  ;;  %v368_v56 = vsel %vm91_vm6, %v367_v53, %v1906_v19  ;;  %1671 = vmatpush3.bf16.msra.mxu0 %v2037_v3 }
  0xa5   :  { %v1917_v26 = vunpack.i.h.bf16 %v1915_v36  ;;  %v1916_v49 = vunpack.i.l.bf16 %v1915_v36  ;;  %v1921_v15 = vunpack.i.l.bf16 %v2610_v47  ;;  %v1922_v42 = vunpack.i.h.bf16 %v2610_v47  ;;  %1672 = vmatprep.subr.bf16.mxu0 %v2038_v35  ;;  %v2041_v36 = vld [vmem:[%s3049_s1 + $0x30] sm:$0xff]  }
  0xa6   :  { %v375_v59 = vsel %vm91_vm6, %v374_v14, %v2364_v57  ;;  %v239_v30 = vsel %vm85_vm3, %v238_v8, %v2247_v18  ;;  %1969 = vrot.lane.b32.xlu0 %v1968_v62, %s2140_s12  ;;  %v268_v18 = vsel %vm83_vm2, %v267_v34, %v2227_v12  ;;  %v412_v37 = vsel %vm89_vm5, %v411_v28, %v2224_v11  ;;  %v2040_v34 = vld [vmem:[%s3049_s1 + $0x70] sm:$0xff]  }
  0xa7   :  { %v274_v31 = vsel %vm81_vm1, %v273_v32, %v1917_v26  ;;  %v419_v43 = vsel %vm89_vm5, %v418_v4, %v1921_v15  ;;  %v1978_v19 = vpack.i.bf16 %v375_v59, %v368_v56  ;;  %v232_v50 = vsel %vm85_vm3, %v231_v20, %v1907_v54 }
  0xa8   :  { %v275_v53 = vsel %vm83_vm2, %v274_v31, %v1922_v42  ;;  %v1925_v57 = vpop.permute.xlu0 %1924  ;;  %v1930_v1 = vpop.permute.xlu1 %1929  ;;  %v420_v25 = vsel %vm91_vm6, %v419_v43, %v2189_v0  ;;  %v141_v33 = vsel %vm91_vm6, %v2525_v52, %v1916_v49  ;;  %1673 = vmatpush3.bf16.msra.mxu0 %v2039_v45  ;;  %v194_v52 = vsel %vm89_vm5, %v2572_v13, %v1901_v44 }
  0xa9   :  { %v1927_v32 = vunpack.i.h.bf16 %v1925_v57  ;;  %v1932_v10 = vunpack.i.h.bf16 %v1930_v1  ;;  %v1931_v6 = vunpack.i.l.bf16 %v1930_v1  ;;  %v1926_v22 = vunpack.i.l.bf16 %v1925_v57  ;;  %1674 = vmatprep.subr.bf16.mxu0 %v2040_v34 }
  0xaa   :  { %v276_v14 = vsel %vm85_vm3, %v275_v53, %v2197_v2  ;;  %1979 = vrot.lane.b32.xlu0 %v1978_v19, %s2141_s19  ;;  %v233_v41 = vsel %vm87_vm4, %v232_v50, %v1912_v27  ;;  %v240_v28 = vsel %vm87_vm4, %v239_v30, %v1917_v26  ;;  %v1973_v21 = vpack.i.bf16 %v2590_v61, %v141_v33 }
  0xab   :  { %v269_v3 = vsel %vm85_vm3, %v268_v18, %v1931_v6  ;;  %v2653_v8 = vsel %vm87_vm4, %v276_v14, %v1932_v10  ;;  %v280_v20 = vsel %vm79_vm0, %v2197_v2, %v1932_v10  ;;  %v413_v54 = vsel %vm91_vm6, %v412_v37, %v1927_v32 }
  0xac   :  { %v270_v47 = vsel %vm87_vm4, %v269_v3, %v1867_v29  ;;  %v1963_v4 = vpack.i.bf16 %v280_v20, %v2224_v11  ;;  %v1988_v58 = vpack.i.bf16 %v420_v25, %v413_v54  ;;  %v188_v11 = vsel %vm91_vm6, %v187_v51, %v1926_v22  ;;  %1675 = vmatpush3.bf16.msra.mxu0 %v2041_v36  ;;  %v2112_v22 = vld [vmem:[%s3048_s0] sm:$0xff] }
  0xad   :  { %v271_v29 = vsel %vm89_vm5, %v270_v47, %v2239_v16  ;;  %v195_v13 = vsel %vm91_vm6, %v194_v52, %v2331_v46  ;;  %v241_v27 = vsel %vm89_vm5, %v240_v28, %v1922_v42  ;;  %v234_v16 = vsel %vm89_vm5, %v233_v41, %v2227_v12  ;;  %1676 = vmatprep.subr.bf16.mxu0 %v2042_v9 }
  0xae   :  { %1964 = vrot.lane.b32.xlu1 %v1963_v4, %s2138_s30  ;;  %v2690_v44 = vsel %vm91_vm6, %v271_v29, %v1876_v55  ;;  %1989 = vrot.lane.b32.xlu0 %v1988_v58, %s2139_s10  ;;  %v1983_v46 = vpack.i.bf16 %v195_v13, %v188_v11  ;;  %v235_v39 = vsel %vm91_vm6, %v234_v16, %v1931_v6  ;;  %v3063_v37 = vrot.slane %v2244_v17, 7  ;;  %v2113_v58 = vld [vmem:[%s3048_s0 + $0x18] sm:$0xff] }
  0xaf   :  { %v242_v55 = vsel %vm91_vm6, %v241_v27, %v2197_v2  ;;  %v3064_v27 = vunpack.i.h.bf16 %v2375_v63  ;;  %v3067_v63 = vunpack.i.h.bf16 %v2441_v40 }
  0xb0   :  { %1677 = vmatpush3.bf16.msra.mxu0 %v2043_v38  ;;  %v1993_v61 = vpack.i.bf16 %v242_v55, %v235_v39  ;;  %v3065_v39 = vunpack.i.l.bf16 %v2423_v60 }
  0xb2   :  { %1974 = vrot.lane.b32.xlu1 %v1973_v21, %s2140_s12 }
  0xb6   :  { %1984 = vrot.lane.b32.xlu1 %v1983_v46, %s2141_s19 }
  0xba   :  { %1994 = vrot.lane.b32.xlu1 %v1993_v61, %s2139_s10 }
  0xf0   :  { %v1935_v26 = vpop.permute.xlu0 %1934 }
  0xf1   :  { %v1936_v49 = vunpack.i.l.bf16 %v1935_v26  ;;  %v1937_v62 = vunpack.i.h.bf16 %v1935_v26  ;;  %v3066_v26 = vunpack.i.l.bf16 %v2411_v48 }
  0xf3   :  { %v104_v12 = vsel %vm79_vm0, %v2189_v0, %v1936_v49 }
  0xf4   :  { %v1945_v15 = vpop.permute.xlu0 %1944  ;;  %v1940_v42 = vpop.permute.xlu1 %1939  ;;  %106 = vrot.lane.b32.xlu1 %v104_v12, %s2138_s30 }
  0xf5   :  { %v1941_v56 = vunpack.i.l.bf16 %v1940_v42  ;;  %v1947_v59 = vunpack.i.h.bf16 %v1945_v15  ;;  %v1946_v30 = vunpack.i.l.bf16 %v1945_v15  ;;  %v1942_v2 = vunpack.i.h.bf16 %v1940_v42 }
  0xf7   :  { %v1998_v31 = vpack.i.bf16 %v1941_v56, %v1937_v62  ;;  %v2003_v35 = vpack.i.bf16 %v1946_v30, %v1942_v2 }
  0xf8   :  { %v249_v43 = vpop.permute.xlu1 %248  ;;  %v1950_v0 = vpop.permute.xlu0 %1949 }
  0xf9   :  { %v2008_v51 = vpack.i.bf16 %v249_v43, %v1947_v59  ;;  %1999 = vrot.lane.b32.xlu0 %v1998_v31, %s2140_s12  ;;  %v1952_v18 = vunpack.i.h.bf16 %v1950_v0  ;;  %v1951_v19 = vunpack.i.l.bf16 %v1950_v0 }
  0xfb   :  { %2009 = vrot.lane.b32.xlu1 %v2008_v51, %s2139_s10  ;;  %v80_v14 = vsel %vm79_vm0, %v2112_v22, %v1951_v19 }
  0xfc   :  { %v1955_v53 = vpop.permute.xlu1 %1954  ;;  %v1960_v1 = vpop.permute.xlu0 %1959 }
  0xfd   :  { %2004 = vrot.lane.b32.xlu0 %v2003_v35, %s2141_s19  ;;  %v1956_v57 = vunpack.i.l.bf16 %v1955_v53  ;;  %v1962_v50 = vunpack.i.h.bf16 %v1960_v1  ;;  %v1961_v10 = vunpack.i.l.bf16 %v1960_v1  ;;  %v1957_v6 = vunpack.i.h.bf16 %v1955_v53 }
  0xff   :  { %v93_v45 = vsel %vm79_vm0, %v1956_v57, %v3063_v37  ;;  %v278_v33 = vsel %vm89_vm5, %v2653_v8, %v1962_v50  ;;  %v82_v17 = vsel %vm81_vm1, %v80_v14, %v1957_v6 }
 0x100   :  { %v94_v25 = vsel %vm81_vm1, %v93_v45, %v1952_v18  ;;  %v84_v4 = vsel %vm83_vm2, %v82_v17, %v2263_v24  ;;  %v279_v28 = vsel %vm91_vm6, %v278_v33, %v2214_v7 }
 0x101   :  { %v95_v20 = vsel %vm83_vm2, %v94_v25, %v1961_v10  ;;  %v86_v16 = vsel %vm85_vm3, %v84_v4, %v3064_v27 }
 0x102   :  { %v96_v8 = vsel %vm85_vm3, %v95_v20, %v2113_v58  ;;  %v88_v49 = vsel %vm87_vm4, %v86_v16, %v3066_v26  ;;  %v2050_v16 = vld [vmem:[%s3051_s3 + $0x8] sm:$0xff]  }
 0x103   :  { %v97_v55 = vsel %vm87_vm4, %v96_v8, %v3065_v39  ;;  %v90_v60 = vsel %vm89_vm5, %v88_v49, %v2260_v23  ;;  %v2052_v39 = vld [vmem:[%s3051_s3 + $0x50] sm:$0xff]  }
 0x104   :  { %v98_v15 = vsel %vm89_vm5, %v97_v55, %v3067_v63  ;;  %v2053_v55 = vld [vmem:[%s3051_s3 + $0xd0] sm:$0xff]  }
 0x105   :  { %v99_v48 = vsel %vm91_vm6, %v98_v15, %v2206_v5 }
 0x118   :  { %v1970_v32 = vpop.permute.xlu0 %1969 }
 0x119   :  { %v1972_v54 = vunpack.i.h.bf16 %v1970_v32  ;;  %v1971_v34 = vunpack.i.l.bf16 %v1970_v32 }
 0x11b   :  { %v503_v29 = vsel %vm491_vm7, %v2690_v44, %v1971_v34  ;;  %v504_v11 = vsel %vm491_vm7, %v279_v28, %v1972_v54 }
 0x11c   :  { %v1980_v3 = vpop.permute.xlu0 %1979 }
 0x11d   :  { %v1982_v36 = vunpack.i.h.bf16 %v1980_v3  ;;  %v1981_v52 = vunpack.i.l.bf16 %v1980_v3 }
 0x11f   :  { %v506_v24 = vsel %vm495_vm8, %v503_v29, %v1981_v52  ;;  %v507_v38 = vsel %vm495_vm8, %v504_v11, %v1982_v36  ;;  %v2770_v52 = vld [vmem:[%s3050_s2] ss:$0 sm:$0xff] }
 0x120   :  { %v1965_v47 = vpop.permute.xlu1 %1964  ;;  %v1990_v41 = vpop.permute.xlu0 %1989  ;;  %v2046_v29 = vld [vmem:[%s3051_s3] sm:$0xff]  }
 0x121   :  { %v1992_v9 = vunpack.i.h.bf16 %v1990_v41  ;;  %v1991_v21 = vunpack.i.l.bf16 %v1990_v41  ;;  %v1966_v61 = vunpack.i.l.bf16 %v1965_v47  ;;  %v1967_v45 = vunpack.i.h.bf16 %v1965_v47  ;;  %v2047_v11 = vld [vmem:[%s3051_s3 + $0x80] sm:$0xff]  }
 0x123   :  { %v509_v46 = vsel %vm499_vm9, %v506_v24, %v1991_v21  ;;  %v510_v7 = vsel %vm499_vm9, %v507_v38, %v1992_v9  ;;  %v92_v30 = vsel %vm91_vm6, %v90_v60, %v1966_v61  ;;  %v2044_v9 = vld [vmem:[%s3051_s3 + $0x40] sm:$0xff]   ;;  %v2049_v24 = vld [vmem:[%s3051_s3 + $0xc8] sm:$0xff]   ;;  %v2057_v60 = vld [vmem:[%s3051_s3 + $0xd8] sm:$0xff]  }
 0x124   :  { %v1975_v13 = vpop.permute.xlu1 %1974  ;;  %v513_v44 = vpack.c.bf16 %v510_v7, %v509_v46  ;;  %v2045_v21 = vld [vmem:[%s3051_s3 + $0xc0] sm:$0xff]   ;;  %1690 = vmatprep.subr.bf16.mxu1 %v2044_v9  ;;  %v2051_v46 = vld [vmem:[%s3051_s3 + $0x88] sm:$0xff]  }
 0x125   :  { %v1977_v42 = vunpack.i.h.bf16 %v1975_v13  ;;  %v1976_v62 = vunpack.i.l.bf16 %v1975_v13  ;;  %v2048_v13 = vld [vmem:[%s3051_s3 + $0x48] sm:$0xff]   ;;  %1712 = vmatprep.subr.bf16.mxu0 %v2045_v21  ;;  %1691 = vmatpush3.bf16.msra.mxu1 %v2046_v29 }
 0x126   :  { %683 = vmatprep.mubr.bf16.mxu0 %v513_v44  ;;  %1692 = vmatprep.subr.bf16.mxu1 %v2048_v13 }
 0x127   :  { %v493_v31 = vsel %vm491_vm7, %v99_v48, %v1977_v42  ;;  %v492_v43 = vsel %vm491_vm7, %v92_v30, %v1976_v62  ;;  %v2055_v62 = vld [vmem:[%s3051_s3 + $0x90] sm:$0xff]   ;;  %v2058_v30 = vld [vmem:[%s3051_s3 + $0x18] sm:$0xff]  }
 0x128   :  { %v1985_v12 = vpop.permute.xlu1 %1984  ;;  %v2059_v48 = vld [vmem:[%s3051_s3 + $0x98] sm:$0xff]  }
 0x129   :  { %v1987_v56 = vunpack.i.h.bf16 %v1985_v12  ;;  %v1986_v59 = vunpack.i.l.bf16 %v1985_v12  ;;  %1693 = vmatpush3.bf16.msra.mxu1 %v2050_v16  ;;  %v2054_v12 = vld [vmem:[%s3051_s3 + $0x10] sm:$0xff]  }
 0x12a   :  { %1694 = vmatprep.subr.bf16.mxu1 %v2052_v39 }
 0x12b   :  { %v496_v35 = vsel %vm495_vm8, %v492_v43, %v1986_v59  ;;  %v497_v0 = vsel %vm495_vm8, %v493_v31, %v1987_v56  ;;  %v2056_v56 = vld [vmem:[%s3051_s3 + $0x58] sm:$0xff]   ;;  %v2061_v31 = vld [vmem:[%s3051_s3 + $0xe0] sm:$0xff]  }
 0x12c   :  { %v1995_v2 = vpop.permute.xlu1 %1994  ;;  %v2062_v43 = vld [vmem:[%s3051_s3 + $0x20] sm:$0xff]  }
 0x12d   :  { %v1997_v40 = vunpack.i.h.bf16 %v1995_v2  ;;  %v1996_v51 = vunpack.i.l.bf16 %v1995_v2  ;;  %1695 = vmatpush3.bf16.msra.mxu1 %v2054_v12  ;;  %v2060_v2 = vld [vmem:[%s3051_s3 + $0x60] sm:$0xff]  }
 0x12e   :  { %1696 = vmatprep.subr.bf16.mxu1 %v2056_v56 }
 0x12f   :  { %v500_v53 = vsel %vm499_vm9, %v496_v35, %v1996_v51  ;;  %v501_v23 = vsel %vm499_vm9, %v497_v0, %v1997_v40  ;;  %v2063_v40 = vld [vmem:[%s3051_s3 + $0xa0] sm:$0xff]   ;;  %v2064_v51 = vld [vmem:[%s3051_s3 + $0x68] sm:$0xff]  }
 0x130   :  { %v512_v57 = vpack.c.bf16 %v501_v23, %v500_v53  ;;  %v2065_v35 = vld [vmem:[%s3051_s3 + $0xe8] sm:$0xff]   ;;  %v2068_v23 = vld [vmem:[%s3051_s3 + $0x70] sm:$0xff]  }
 0x131   :  { %1697 = vmatpush3.bf16.msra.mxu1 %v2058_v30  ;;  %v2066_v0 = vld [vmem:[%s3051_s3 + $0x28] sm:$0xff]  }
 0x132   :  { %684 = vmatmul.mubr.bf16.vlgmr.msra.gmra.mrb[0].mxu0 %v512_v57  ;;  %1698 = vmatprep.subr.bf16.mxu1 %v2060_v2  ;;  %v2067_v53 = vld [vmem:[%s3051_s3 + $0xa8] sm:$0xff]   ;;  %v2069_v57 = vld [vmem:[%s3051_s3 + $0xf0] sm:$0xff]  }
 0x133   :  { %1713 = vmatpush3.bf16.msra.mxu0 %v2047_v11 }
 0x134   :  { %1714 = vmatprep.subr.bf16.mxu0 %v2049_v24  ;;  %v2084_v24 = vld [vmem:[%s3053_s5 + $0xc0] sm:$0xff]  }
 0x135   :  { %1699 = vmatpush3.bf16.msra.mxu1 %v2062_v43  ;;  %v2077_v43 = vld [vmem:[%s3053_s5] sm:$0xff]  }
 0x136   :  { %1700 = vmatprep.subr.bf16.mxu1 %v2064_v51 }
 0x137   :  { %1715 = vmatpush3.bf16.msra.mxu0 %v2051_v46 }
 0x138   :  { %1716 = vmatprep.subr.bf16.mxu0 %v2053_v55 }
 0x139   :  { %1701 = vmatpush3.bf16.msra.mxu1 %v2066_v0  ;;  %v2088_v0 = vld [vmem:[%s3053_s5 + $0xc8] sm:$0xff]  }
 0x13a   :  { %1702 = vmatprep.subr.bf16.mxu1 %v2068_v23  ;;  %v2079_v23 = vld [vmem:[%s3053_s5 + $0x8] sm:$0xff]  }
 0x13b   :  { %1717 = vmatpush3.bf16.msra.mxu0 %v2055_v62 }
 0x13c   :  { %1718 = vmatprep.subr.bf16.mxu0 %v2057_v60 }
 0x13f   :  { %1719 = vmatpush3.bf16.msra.mxu0 %v2059_v48 }
 0x140   :  { %1720 = vmatprep.subr.bf16.mxu0 %v2061_v31 }
 0x143   :  { %1721 = vmatpush3.bf16.msra.mxu0 %v2063_v40  ;;  %v2085_v40 = vld [vmem:[%s3053_s5 + $0x80] sm:$0xff]  }
 0x144   :  { %1722 = vmatprep.subr.bf16.mxu0 %v2065_v35  ;;  %v2078_v35 = vld [vmem:[%s3053_s5 + $0x48] sm:$0xff]  }
 0x147   :  { %1723 = vmatpush3.bf16.msra.mxu0 %v2067_v53  ;;  %v2142_v53 = vmov 0.0|0.0  }
 0x148   :  { %1724 = vmatprep.subr.bf16.mxu0 %v2069_v57  ;;  %v2089_v57 = vld [vmem:[%s3053_s5 + $0x88] sm:$0xff]  }
 0x166   :  { %v107_v1 = vpop.permute.xlu1 %106 }
 0x16b   :  { %v2000_v18 = vpop.permute.xlu0 %1999 }
 0x16c   :  { %v2002_v5 = vunpack.i.h.bf16 %v2000_v18  ;;  %v2001_v19 = vunpack.i.l.bf16 %v2000_v18 }
 0x16d   :  { %v2010_v37 = vpop.permute.xlu1 %2009 }
 0x16e   :  { %v494_v6 = vsel %vm491_vm7, %v107_v1, %v2002_v5  ;;  %v505_v22 = vsel %vm491_vm7, %v1967_v45, %v2001_v19  ;;  %v2012_v14 = vunpack.i.h.bf16 %v2010_v37  ;;  %v2011_v25 = vunpack.i.l.bf16 %v2010_v37  ;;  %v2070_v37 = vld [vmem:[%s3051_s3 + $0x30] sm:$0xff]  }
 0x16f   :  { %v2005_v50 = vpop.permute.xlu0 %2004  ;;  %v2071_v45 = vld [vmem:[%s3051_s3 + $0xb0] sm:$0xff]   ;;  %1703 = vmatpush3.bf16.msra.mxu1 %v2070_v37  ;;  %v2082_v37 = vld [vmem:[%s3053_s5 + $0x58] sm:$0xff]  }
 0x170   :  { %v2007_v32 = vunpack.i.h.bf16 %v2005_v50  ;;  %v2006_v10 = vunpack.i.l.bf16 %v2005_v50  ;;  %v2072_v50 = vld [vmem:[%s3051_s3 + $0x78] sm:$0xff]   ;;  %1725 = vmatpush3.bf16.msra.mxu0 %v2071_v45 }
 0x171   :  { %1704 = vmatprep.subr.bf16.mxu1 %v2072_v50  ;;  %v2096_v45 = vld [vmem:[%s3053_s5 + $0xd8] sm:$0xff]  }
 0x172   :  { %v498_v33 = vsel %vm495_vm8, %v494_v6, %v2007_v32  ;;  %v508_v3 = vsel %vm495_vm8, %v505_v22, %v2006_v10  ;;  %v2073_v10 = vld [vmem:[%s3051_s3 + $0xf8] sm:$0xff]  }
 0x173   :  { %v511_v17 = vsel %vm499_vm9, %v508_v3, %v2011_v25  ;;  %v502_v20 = vsel %vm499_vm9, %v498_v33, %v2012_v14  ;;  %1726 = vmatprep.subr.bf16.mxu0 %v2073_v10  ;;  %v2074_v14 = vld [vmem:[%s3051_s3 + $0x38] sm:$0xff]   ;;  %v2086_v10 = vld [vmem:[%s3053_s5 + $0x60] sm:$0xff]  }
 0x174   :  { %v515_v54 = vpack.c.bf16 %v511_v17, %v511_v17  ;;  %v514_v34 = vpack.c.bf16 %v502_v20, %v502_v20  ;;  %v2075_v25 = vld [vmem:[%s3051_s3 + $0xb8] sm:$0xff]   ;;  %1705 = vmatpush3.bf16.msra.mxu1 %v2074_v14  ;;  %v2101_v14 = vld [vmem:[%s3053_s5 + $0xa0] sm:$0xff]  }
 0x175   :  { %1727 = vmatpush3.bf16.msra.mxu0 %v2075_v25  ;;  %v2083_v50 = vld [vmem:[%s3053_s5 + $0x18] sm:$0xff]   ;;  %v2090_v25 = vld [vmem:[%s3053_s5 + $0x68] sm:$0xff]  }
 0x176   :  { %691 = vmatprep.mubr.bf16.mxu0 %v515_v54  ;;  %v2076_v54 = vld [vmem:[%s3053_s5 + $0x40] sm:$0xff]   ;;  %1756 = vmatprep.subr.bf16.mxu0 %v2084_v24 }
 0x177   :  { %692 = vmatmul.mubr.bf16.gmra.mrb[4].mxu0 %v514_v34  ;;  %1734 = vmatprep.subr.bf16.mxu1 %v2076_v54  ;;  %v2099_v54 = vld [vmem:[%s3053_s5 + $0x38] sm:$0xff]  }
 0x205   :  { %v1678_v36 = vpop.f32.mrb[0].mxu0 }
 0x206   :  { %v1679_v47 = vpop.f32.mrb[1].mxu0 }
 0x207   :  { %v1680_v4 = vadd.f32 %v1679_v47, %v1678_v36  ;;  %v1681_v58 = vpop.f32.mrb[2].mxu0 }
 0x208   :  { %v1682_v8 = vpop.f32.mrb[3].mxu0 }
 0x209   :  { %v686_v41 = vadd.f32 %v1680_v4, %v2770_v52  ;;  %v1683_v28 = vadd.f32 %v1682_v8, %v1681_v58 }
 0x20b   :  { %v2791_v38 = vmax.f32 %v686_v41, 0.0  ;;  %v689_v27 = vadd.f32 %v1683_v28, %v2770_v52 }
 0x20d   :  { %v2800_v7 = vmax.f32 %v689_v27, 0.0  ;;  %v715_v44 = vrot.slane %v2791_v38, 3  ;;  %v730_v26 = vrot.slane %v2791_v38, 6  ;;  %v710_v3 = vrot.slane %v2791_v38, 2 }
 0x20e   :  { %v704_v20 = vrot.slane %v2791_v38, 1  ;;  %v735_v47 = vrot.slane %v2791_v38, 7  ;;  %v720_v9 = vrot.slane %v2791_v38, 4  ;;  %v725_v11 = vrot.slane %v2791_v38, 5 }
 0x20f   :  { %v717_v61 = vrot.slane %v2800_v7, 3  ;;  %v732_v49 = vrot.slane %v2800_v7, 6  ;;  %v702_v15 = vsel %vm79_vm0, %v2791_v38, %v2800_v7  ;;  %v712_v22 = vrot.slane %v2800_v7, 2 }
 0x210   :  { %v707_v17 = vrot.slane %v2800_v7, 1  ;;  %v722_v41 = vrot.slane %v2800_v7, 4  ;;  %v727_v21 = vrot.slane %v2800_v7, 5 }
 0x211   :  { %v719_v63 = vsel %vm79_vm0, %v715_v44, %v717_v61  ;;  %v734_v42 = vsel %vm79_vm0, %v730_v26, %v732_v49  ;;  %v714_v36 = vsel %vm79_vm0, %v710_v3, %v712_v22  ;;  %v2087_v22 = vld [vmem:[%s3053_s5 + $0x20] sm:$0xff]   ;;  %v2094_v3 = vld [vmem:[%s3053_s5 + $0x70] sm:$0xff]  }
 0x212   :  { %755 = vrot.lane.b32.xlu1 %v719_v63, %s2140_s12  ;;  %v2013_v59 = vpack.i.bf16 %v734_v42, %v702_v15  ;;  %v709_v58 = vsel %vm79_vm0, %v704_v20, %v707_v17  ;;  %v724_v29 = vsel %vm79_vm0, %v720_v9, %v722_v41  ;;  %v729_v13 = vsel %vm79_vm0, %v725_v11, %v727_v21  ;;  %v2095_v17 = vld [vmem:[%s3053_s5 + $0x30] sm:$0xff]   ;;  %v2098_v20 = vld [vmem:[%s3053_s5 + $0x78] sm:$0xff]  }
 0x213   :  { %v2108_v41 = vld [vmem:[%s3053_s5 + $0x110] sm:$0xff]   ;;  %v2110_v9 = vld [vmem:[%s3053_s5 + $0xb8] sm:$0xff]  }
 0x214   :  { %2014 = vrot.lane.b32.xlu0 %v2013_v59, %s2140_s12  ;;  %v2111_v21 = vld [vmem:[%s3053_s5 + $0x118] sm:$0xff]  }
 0x24a   :  { %v1684_v1 = vpop.f32.mrb[4].mxu0 }
 0x24b   :  { %v1685_v18 = vpop.f32.mrb[5].mxu0 }
 0x24c   :  { %v1686_v5 = vadd.f32 %v1685_v18, %v1684_v1  ;;  %v1687_v19 = vpop.f32.mrb[6].mxu0  ;;  %v2080_v1 = vld [vmem:[%s3053_s5 + $0x50] sm:$0xff]  }
 0x24d   :  { %v1688_v32 = vpop.f32.mrb[7].mxu0  ;;  %v2092_v18 = vld [vmem:[%s3053_s5 + $0xd0] sm:$0xff]  }
 0x24e   :  { %v694_v6 = vadd.f32 %v1686_v5, %v2770_v52  ;;  %v2081_v5 = vld [vmem:[%s3053_s5 + $0x10] sm:$0xff]   ;;  %v2097_v32 = vld [vmem:[%s3053_s5 + $0x98] sm:$0xff]  }
 0x24f   :  { %v2093_v19 = vld [vmem:[%s3053_s5 + $0x90] sm:$0xff]  }
 0x250   :  { %v701_v33 = vmax.f32 %v694_v6, 0.0  ;;  %v2100_v6 = vld [vmem:[%s3053_s5 + $0xe0] sm:$0xff]  }
 0x252   :  { %v738_v34 = vrot.slane %v701_v33, 7  ;;  %v741_v52 = vsel %vm79_vm0, %v2800_v7, %v701_v33  ;;  %v2091_v33 = vld [vmem:[%s3053_s5 + $0x28] sm:$0xff]  }
 0x253   :  { %v2018_v4 = vpack.i.bf16 %v741_v52, %v714_v36  ;;  %v2143_v36 = vmov 0.0   ;;  %v2103_v52 = vld [vmem:[%s3053_s5 + $0xe8] sm:$0xff]  }
 0x254   :  { %v740_v8 = vsel %vm79_vm0, %v735_v47, %v738_v34  ;;  %v2102_v34 = vld [vmem:[%s3053_s5 + $0x100] sm:$0xff]   ;;  %v2104_v47 = vld [vmem:[%s3053_s5 + $0xa8] sm:$0xff]  }
 0x255   :  { %2019 = vrot.lane.b32.xlu0 %v2018_v4, %s2139_s10  ;;  %v2023_v28 = vpack.i.bf16 %v740_v8, %v709_v58  ;;  %v2105_v4 = vld [vmem:[%s3053_s5 + $0x108] sm:$0xff]   ;;  %v2106_v58 = vld [vmem:[%s3053_s5 + $0xf0] sm:$0xff]  }
 0x256   :  { %v2107_v8 = vld [vmem:[%s3053_s5 + $0xb0] sm:$0xff]  }
 0x257   :  { %2024 = vrot.lane.b32.xlu1 %v2023_v28, %s2141_s19  ;;  %v2109_v28 = vld [vmem:[%s3053_s5 + $0xf8] sm:$0xff]  }
 0x259   :  { %759 = vrot.lane.b32.xlu0 %v724_v29, %s2141_s19 }
 0x25b   :  { %763 = vrot.lane.b32.xlu1 %v729_v13, %s2139_s10  ;;  %v1589_v13 = vld [vmem:[%s3052_s4] ss:$0 sm:$0xff] }
 0x284   :  { %v756_v16 = vpop.permute.xlu1 %755 }
 0x285   :  { %v781_v44 = vsel %vm491_vm7, 0.0, %v756_v16 }
 0x286   :  { %v2015_v27 = vpop.permute.xlu0 %2014 }
 0x287   :  { %v2017_v46 = vunpack.i.h.bf16 %v2015_v27  ;;  %v2016_v7 = vunpack.i.l.bf16 %v2015_v27 }
 0x289   :  { %v784_v26 = vsel %vm491_vm7, 0.0, %v2017_v46  ;;  %v778_v49 = vsel %vm491_vm7, 0.0, %v2016_v7 }
 0x2c7   :  { %v2020_v39 = vpop.permute.xlu0 %2019 }
 0x2c8   :  { %v2022_v12 = vunpack.i.h.bf16 %v2020_v39  ;;  %v2021_v63 = vunpack.i.l.bf16 %v2020_v39 }
 0x2c9   :  { %v2025_v55 = vpop.permute.xlu1 %2024 }
 0x2ca   :  { %v2027_v38 = vunpack.i.h.bf16 %v2025_v55  ;;  %v2026_v61 = vunpack.i.l.bf16 %v2025_v55 }
 0x2cb   :  { %v760_v15 = vpop.permute.xlu0 %759 }
 0x2cc   :  { %v785_v42 = vsel %vm495_vm8, %v784_v26, %v2027_v38  ;;  %v782_v62 = vsel %vm495_vm8, %v781_v44, %v760_v15  ;;  %v779_v56 = vsel %vm495_vm8, %v778_v49, %v2026_v61 }
 0x2cd   :  { %v764_v59 = vpop.permute.xlu1 %763  ;;  %v780_v60 = vsel %vm499_vm9, %v779_v56, %v2021_v63  ;;  %v786_v30 = vsel %vm499_vm9, %v785_v42, %v2022_v12 }
 0x2ce   :  { %v783_v48 = vsel %vm499_vm9, %v782_v62, %v764_v59  ;;  %v788_v2 = vpack.c.bf16 %v780_v60, %v780_v60  ;;  %v790_v31 = vpack.c.bf16 %v786_v30, %v786_v30 }
 0x2cf   :  { %v789_v51 = vpack.c.bf16 %v783_v48, %v783_v48  ;;  %v1622_v48 = vld [vmem:[%s3054_s6] ss:$0 sm:$0xff] }
 0x2d0   :  { %1086 = vmatprep.mubr.bf16.mxu1 %v788_v2  ;;  %1126 = vmatprep.mubr.bf16.mxu0 %v790_v31 }
 0x2d1   :  { %1087 = vmatmul.mubr.bf16.vlgmr.msra.gmra.mrb[0].mxu1 %v2142_v53  ;;  %1127 = vmatmul.mubr.bf16.vlgmr.msra.gmra.mrb[8].mxu0 %v789_v51 }
 0x2d2   :  { %1735 = vmatpush3.bf16.msra.mxu1 %v2077_v43  ;;  %1757 = vmatpush3.bf16.msra.mxu0 %v2085_v40 }
 0x2d3   :  { %1736 = vmatprep.subr.bf16.mxu1 %v2078_v35  ;;  %1758 = vmatprep.subr.bf16.mxu0 %v2088_v0 }
 0x2d4   :  { %1467 = vmatprep.mubr.bf16.mxu1 %v2142_v53  ;;  %1507 = vmatprep.mubr.bf16.mxu0 %v2142_v53 }
 0x2d6   :  { %1737 = vmatpush3.bf16.msra.mxu1 %v2079_v23  ;;  %1759 = vmatpush3.bf16.msra.mxu0 %v2089_v57 }
 0x2d7   :  { %1738 = vmatprep.subr.bf16.mxu1 %v2080_v1  ;;  %1760 = vmatprep.subr.bf16.mxu0 %v2092_v18 }
 0x2da   :  { %1739 = vmatpush3.bf16.msra.mxu1 %v2081_v5  ;;  %1761 = vmatpush3.bf16.msra.mxu0 %v2093_v19 }
 0x2db   :  { %1740 = vmatprep.subr.bf16.mxu1 %v2082_v37  ;;  %1762 = vmatprep.subr.bf16.mxu0 %v2096_v45 }
 0x2de   :  { %1741 = vmatpush3.bf16.msra.mxu1 %v2083_v50  ;;  %1763 = vmatpush3.bf16.msra.mxu0 %v2097_v32 }
 0x2df   :  { %1742 = vmatprep.subr.bf16.mxu1 %v2086_v10  ;;  %1764 = vmatprep.subr.bf16.mxu0 %v2100_v6 }
 0x2e2   :  { %1743 = vmatpush3.bf16.msra.mxu1 %v2087_v22  ;;  %1765 = vmatpush3.bf16.msra.mxu0 %v2101_v14 }
 0x2e3   :  { %1744 = vmatprep.subr.bf16.mxu1 %v2090_v25  ;;  %1766 = vmatprep.subr.bf16.mxu0 %v2103_v52 }
 0x2e6   :  { %1745 = vmatpush3.bf16.msra.mxu1 %v2091_v33  ;;  %1767 = vmatpush3.bf16.msra.mxu0 %v2104_v47 }
 0x2e7   :  { %1746 = vmatprep.subr.bf16.mxu1 %v2094_v3  ;;  %1768 = vmatprep.subr.bf16.mxu0 %v2106_v58 }
 0x2ea   :  { %1747 = vmatpush3.bf16.msra.mxu1 %v2095_v17  ;;  %1769 = vmatpush3.bf16.msra.mxu0 %v2107_v8 }
 0x2eb   :  { %1748 = vmatprep.subr.bf16.mxu1 %v2098_v20  ;;  %1770 = vmatprep.subr.bf16.mxu0 %v2109_v28 }
 0x2ee   :  { %1749 = vmatpush3.bf16.msra.mxu1 %v2099_v54  ;;  %1771 = vmatpush3.bf16.msra.mxu0 %v2110_v9 }
 0x2ef   :  { %1783 = vmatprep.subr.bf16.mxu1 %v2143_v36 }
 0x2f1   :  { %1468 = vmatmul.mubr.bf16.vlgmr.msra.gmra.mrb[4].mxu1 %v2142_v53 }
 0x2f2   :  { %1784 = vmatpush3.bf16.msra.mxu1 %v2102_v34  ;;  %1791 = vmatprep.mubr.msk.bf16.mxu1 %vm2144_vm10, %v2143_v36 }
 0x2f3   :  { %1785 = vmatprep.subr.bf16.mxu1 %v2143_v36 }
 0x2f6   :  { %1786 = vmatpush3.bf16.msra.mxu1 %v2105_v4 }
 0x2f7   :  { %1787 = vmatprep.subr.bf16.mxu1 %v2143_v36 }
 0x2fa   :  { %1788 = vmatpush3.bf16.msra.mxu1 %v2108_v41 }
 0x2fb   :  { %1789 = vmatprep.subr.bf16.mxu1 %v2143_v36 }
 0x2fe   :  { %1790 = vmatpush3.bf16.msra.mxu1 %v2111_v21 }
 0x301   :  { %1792 = vmatmul.mubr.bf16.vlgmr.msra.gmra.mrb[8].mxu1 %v2142_v53 }
 0x3a4   :  { %v1706_v29 = vpop.f32.mrb[0].mxu1  ;;  %v1728_v11 = vpop.f32.mrb[8].mxu0 }
 0x3a5   :  { %v1707_v24 = vpop.f32.mrb[1].mxu1  ;;  %v1729_v27 = vpop.f32.mrb[9].mxu0 }
 0x3a6   :  { %v1708_v16 = vadd.f32 %v1707_v24, %v1706_v29  ;;  %v1730_v46 = vadd.f32 %v1729_v27, %v1728_v11  ;;  %v1709_v7 = vpop.f32.mrb[2].mxu1  ;;  %v1731_v39 = vpop.f32.mrb[10].mxu0 }
 0x3a7   :  { %v1710_v55 = vpop.f32.mrb[3].mxu1  ;;  %v1732_v44 = vpop.f32.mrb[11].mxu0 }
 0x3a8   :  { %v1089_v38 = vadd.f32 %v1708_v16, %v1589_v13 }
 0x3aa   :  { %v1129_v61 = vadd.f32 %v1730_v46, %v1089_v38 }
 0x3ac   :  { %v1134_v26 = vmax.f32 %v1129_v61, 0.0 }
 0x3ae   :  { %v1660_v49 = vpack.c.bf16 %v1134_v26, %v1134_v26 }
 0x3b0   :  { %1661 = vmatmul.mubr.msk.bf16.vlgmr.msra.gmra.mrb[12].mxu0 %vm1659_vm11, %v1660_v49 }
 0x3c4   :  { %v1750_v12 = vpop.f32.mrb[4].mxu1 }
 0x3c5   :  { %v1751_v63 = vpop.f32.mrb[5].mxu1 }
 0x3c6   :  { %v1752_v15 = vadd.f32 %v1751_v63, %v1750_v12  ;;  %v1753_v42 = vpop.f32.mrb[6].mxu1 }
 0x3c7   :  { %v1754_v62 = vpop.f32.mrb[7].mxu1 }
 0x3c8   :  { %v1470_v43 = vadd.f32 %v1752_v15, %v1622_v48 }
 0x3d4   :  { %v1549_v56 = vpop.f32.mrb[8].mxu1 }
 0x3d5   :  { %v1793_v59 = vpop.f32.mrb[9].mxu1 }
 0x3d6   :  { %v1552_v60 = vpop.f32.mrb[10].mxu1 }
 0x3d7   :  { %v1794_v30 = vpop.f32.mrb[11].mxu1 }
 0x483   :  { %v1772_v2 = vpop.f32.mrb[12].mxu0 }
 0x484   :  { %v1773_v31 = vpop.f32.mrb[13].mxu0 }
 0x485   :  { %v1774_v40 = vadd.f32 %v1773_v31, %v1772_v2  ;;  %v1775_v51 = vpop.f32.mrb[14].mxu0 }
 0x486   :  { %v1776_v35 = vpop.f32.mrb[15].mxu0 }
 0x487   :  { %v1510_v0 = vadd.f32 %v1774_v40, %v1470_v43 }
 0x489   :  { %v1550_v53 = vadd.f32 %v1549_v56, %v1510_v0 }
 0x48b   :  { %v1555_v23 = vmax.f32 %v1550_v53, 0.0 }
 0x48d   :  { %1557 = vst.msk [vmem:[#allocation2] sm:$0x3] %vm1556_vm12, %v1555_v23 }
 0x48e   :  { %2125 = shalt.err (!%p2122_p4)
}
 0x48f   :  { %s2126_s20 = scalar_lea.hbm %s3055_s7, 32 }
 0x490   :  { %p2127_p5 = scmp.ne.s32.totalorder %s3055_s7, %s2126_s20  ;;  %p2130_p6 = scmp.lt.u32.totalorder %s2126_s20, %s3055_s7 }
 0x492   :  { %p2132_p7 = pnand %p2130_p6, %p2127_p5 }
 0x494   :  { %2135 = shalt.err (!%p2132_p7)
}
 0x495   :  { %1567 = dma.vmem_to_hbm [thread:$0]  %s1565_s17, 32, %s3055_s7, [#allocation3]  }
 0x496   :  { %2136 = dma.done.wait [#allocation3], 32  }
 0x497   :  { %2137 = vsyncadd [#allocation3], 4294967264 }
 0x498   :  { %1571 = vsyncpa [#allocation3], 1 }

</bundles_post_ra>
